<compile_context>
chip_gen: v6e
topology: v6e:2x2x1
jax: 0.10.0
libtpu: 0.0.40
codegen_flags: <defaults>
</compile_context>

<pallas_src>
import jax
import jax.numpy as jnp
from jax.experimental import pallas as pl
from jax.experimental.pallas import tpu as pltpu

LANES = 128          # output feature dims are zero-padded to this (lane-dense)
FC_K = 512           # fc1 contraction dim: 16*5*5 = 400 real, padded to 512
CONV_BB = 8          # images per conv grid step (fits v5e 16 MiB scoped VMEM)
FC_RB = 256          # max FC rows per grid step


# ----------------------------- Pallas kernels -----------------------------

def _conv_relu_pool_kernel(cols_ref, w_ref, b_ref, o_ref):
    """Fused conv (im2col matmul) + bias + ReLU + 2x2 max-pool.

    cols_ref: (bB, 4, Mpad, Kpad) bf16 -- patches for bB images, grouped by
              the four positions inside each 2x2 pooling window
              (Mpad = pooled H*W padded to a multiple of 16).
    w_ref: (Kpad, 128) bf16   b_ref: (1, 128) f32   o_ref: (bB, Mpad, 128) bf16
    """
    bB, G, Mpad, Kpad = cols_ref.shape
    # One big MXU dot (single RHS push, large M) instead of 4*bB small ones.
    x = cols_ref[...].reshape(bB * G * Mpad, Kpad)
    y = jnp.dot(x, w_ref[...], preferred_element_type=jnp.float32)
    y = jnp.maximum(y + b_ref[...], 0.0)          # bias broadcast emitted once
    y = y.reshape(bB, G, Mpad, LANES)
    # max over the 4 pool-window positions == MaxPool2d(2, 2) of ReLU(conv)
    o_ref[...] = jnp.maximum(jnp.maximum(y[:, 0], y[:, 1]),
                             jnp.maximum(y[:, 2], y[:, 3])).astype(o_ref.dtype)


def _fc_fused_kernel(x_ref, w1_ref, b1_ref, w2_ref, b2_ref, w3_ref, b3_ref,
                     o_ref):
    """fc1 -> ReLU -> fc2 -> ReLU -> fc3 in one launch; activations stay in
    VMEM.  bf16 MXU inputs, f32 accumulate + f32 biases."""
    h = jnp.dot(x_ref[...], w1_ref[...], preferred_element_type=jnp.float32)
    h = jnp.maximum(h + b1_ref[...], 0.0).astype(jnp.bfloat16)
    h = jnp.dot(h, w2_ref[...], preferred_element_type=jnp.float32)
    h = jnp.maximum(h + b2_ref[...], 0.0).astype(jnp.bfloat16)
    o_ref[...] = (jnp.dot(h, w3_ref[...], preferred_element_type=jnp.float32)
                  + b3_ref[...])


# ------------------------------ Pallas wrappers ----------------------------

def conv_relu_pool(cols, w, b):
    """cols: (B, 4, Mpad, Kpad) bf16; w: (Kpad, 128) bf16; b: (1, 128) f32.
    Returns (B, Mpad, 128) bf16."""
    B, G, Mpad, Kpad = cols.shape
    bB = B if B < CONV_BB else CONV_BB
    grid = (pl.cdiv(B, bB),)
    flops = 2 * B * G * Mpad * Kpad * LANES
    bytes_accessed = (cols.size * 2 + w.size * 2 + b.size * 4
                      + B * Mpad * LANES * 2)
    return pl.pallas_call(
        _conv_relu_pool_kernel,
        out_shape=jax.ShapeDtypeStruct((B, Mpad, LANES), jnp.bfloat16),
        grid=grid,
        in_specs=[
            pl.BlockSpec((bB, G, Mpad, Kpad), lambda i: (i, 0, 0, 0)),
            pl.BlockSpec((Kpad, LANES), lambda i: (0, 0)),   # stays resident
            pl.BlockSpec((1, LANES), lambda i: (0, 0)),      # stays resident
        ],
        out_specs=pl.BlockSpec((bB, Mpad, LANES), lambda i: (i, 0, 0)),
        compiler_params=pltpu.CompilerParams(
            dimension_semantics=("parallel",)),
        cost_estimate=pl.CostEstimate(flops=flops, transcendentals=0,
                                      bytes_accessed=bytes_accessed),
    )(cols, w, b)


def fc_head(x, w1, b1, w2, b2, w3, b3):
    """x: (B, 512) bf16 -> (B, 128) f32 (valid logits in the first 10 lanes)."""
    B, K = x.shape
    rb = B if B < FC_RB else FC_RB
    grid = (pl.cdiv(B, rb),)
    operands = (x, w1, b1, w2, b2, w3, b3)
    flops = 2 * B * (K + LANES + LANES) * LANES
    bytes_accessed = (sum(int(o.size) * o.dtype.itemsize for o in operands)
                      + B * LANES * 4)

    def resident(a):
        return pl.BlockSpec(a.shape, lambda i: (0,) * a.ndim)

    return pl.pallas_call(
        _fc_fused_kernel,
        out_shape=jax.ShapeDtypeStruct((B, LANES), jnp.float32),
        grid=grid,
        in_specs=[pl.BlockSpec((rb, K), lambda i: (i, 0))]
                 + [resident(o) for o in operands[1:]],
        out_specs=pl.BlockSpec((rb, LANES), lambda i: (i, 0)),
        compiler_params=pltpu.CompilerParams(
            dimension_semantics=("parallel",)),
        cost_estimate=pl.CostEstimate(flops=flops, transcendentals=0,
                                      bytes_accessed=bytes_accessed),
    )(*operands)


# ------------------------------- JAX glue ----------------------------------

def _im2col_pooled(x_nhwc, k, k_pad):
    """Extract kxk valid-conv patches in bf16, grouped by 2x2 pool position.

    (B, H, W, C) -> (B, 4, Mpad, k_pad); patch feature order (ky, kx, c),
    pooled positions row-major (ph, pw); M padded up to a multiple of 16 and
    K zero-padded to k_pad for MXU / bf16-tile alignment.
    """
    B, H, W, C = x_nhwc.shape
    OH, OW = H - k + 1, W - k + 1
    PH, PW = OH // 2, OW // 2
    M, K = PH * PW, k * k * C
    m_pad = ((M + 15) // 16) * 16
    x_bf16 = x_nhwc.astype(jnp.bfloat16)
    patches = [x_bf16[:, ky:ky + OH, kx:kx + OW, :]
               for ky in range(k) for kx in range(k)]
    cols = jnp.stack(patches, axis=3).reshape(B, OH, OW, K)
    # Group the 4 positions of each 2x2 pool window along a new axis so the
    # kernel fuses ReLU + max-pool onto a single merged matmul.
    cols = cols.reshape(B, PH, 2, PW, 2, K)
    cols = jnp.transpose(cols, (0, 2, 4, 1, 3, 5)).reshape(B, 4, M, K)
    cols = jnp.pad(cols, ((0, 0), (0, 0), (0, m_pad - M), (0, k_pad - K)))
    # TODO(synk): patch extraction remains XLA glue (one fused stack/transpose
    # producing the kernel's layout) rather than in-kernel DMA/im2col.
    return cols, (PH, PW)


# ---------------------------- Parameter setup -------------------------------

def init_params(key):
    """Deterministic synthetic parameters matching the PyTorch module shapes."""
    ks = jax.random.split(key, 10)

    def unif(k, shape, fan_in):
        bound = 1.0 / jnp.sqrt(fan_in)
        return jax.random.uniform(k, shape, jnp.float32, -bound, bound)

    return {
        "conv1_w": unif(ks[0], (6, 3, 5, 5), 3 * 5 * 5),
        "conv1_b": unif(ks[1], (6,), 3 * 5 * 5),
        "conv2_w": unif(ks[2], (16, 6, 5, 5), 6 * 5 * 5),
        "conv2_b": unif(ks[3], (16,), 6 * 5 * 5),
        "fc1_w": unif(ks[4], (120, 400), 400),
        "fc1_b": unif(ks[5], (120,), 400),
        "fc2_w": unif(ks[6], (84, 120), 120),
        "fc2_b": unif(ks[7], (84,), 120),
        "fc3_w": unif(ks[8], (10, 84), 84),
        "fc3_b": unif(ks[9], (10,), 84),
    }


def prepare_params(p):
    """One-time conversion to kernel-ready layouts: permute, zero-pad to the
    128-lane grid, cast all matmul weights to bf16 (biases stay f32).
    Removes every transpose / .T from the traced forward pass and keeps fc1's
    contraction dim compact (512 instead of 3200)."""

    def pad2(a, rows, cols):
        r, c = a.shape
        return jnp.pad(a, ((0, rows - r), (0, cols - c)))

    def conv_w(w, k_pad):
        # (CO, CI, kh, kw) -> (kh*kw*CI, CO) with row order (ky, kx, c)
        co, ci, kh, kw = w.shape
        m = jnp.transpose(w, (2, 3, 1, 0)).reshape(kh * kw * ci, co)
        return pad2(m, k_pad, LANES).astype(jnp.bfloat16)

    def bias(b):
        return pad2(b.reshape(1, -1), 1, LANES)

    # fc1 consumes compact (25 pooled positions, 16 channels) features in
    # (h, w, c) row order; PyTorch's view(-1, 400) order is (c, h, w) -> permute.
    f1 = p["fc1_w"].reshape(120, 16, 5, 5)          # (co, c, h, w)
    f1 = jnp.transpose(f1, (2, 3, 1, 0)).reshape(5 * 5 * 16, 120)
    f1 = pad2(f1, FC_K, LANES).astype(jnp.bfloat16)

    return {
        "conv1_w": conv_w(p["conv1_w"], 128),
        "conv1_b": bias(p["conv1_b"]),
        "conv2_w": conv_w(p["conv2_w"], 256),
        "conv2_b": bias(p["conv2_b"]),
        "fc1_w": f1,
        "fc1_b": bias(p["fc1_b"]),
        "fc2_w": pad2(p["fc2_w"].T, LANES, LANES).astype(jnp.bfloat16),
        "fc2_b": bias(p["fc2_b"]),
        "fc3_w": pad2(p["fc3_w"].T, LANES, LANES).astype(jnp.bfloat16),
        "fc3_b": bias(p["fc3_b"]),
    }


# ------------------------------ Forward pass --------------------------------

@jax.jit
def net_forward(kp, x_nchw):
    """Replicates Net.forward. x_nchw: (B, 3, 32, 32) float32 -> (B, 10)."""
    B = x_nchw.shape[0]
    x = jnp.transpose(x_nchw, (0, 2, 3, 1))                     # NCHW -> NHWC

    # conv1 + ReLU + 2x2 pool : (B,32,32,3) -> (B, 208, 128)  (196 x 6 valid)
    cols1, (ph1, pw1) = _im2col_pooled(x, 5, 128)
    y1 = conv_relu_pool(cols1, kp["conv1_w"], kp["conv1_b"])

    # conv2 + ReLU + 2x2 pool : (B,14,14,6) -> (B, 32, 128)   (25 x 16 valid)
    fm1 = y1[:, :ph1 * pw1, :6].reshape(B, ph1, pw1, 6)
    cols2, (ph2, pw2) = _im2col_pooled(fm1, 5, 256)
    y2 = conv_relu_pool(cols2, kp["conv2_w"], kp["conv2_b"])

    # Compact FC features: keep the 16 valid channels only ->
    # (B, 25, 16) -> (B, 400) -> zero-pad to (B, 512) bf16.
    nfeat = ph2 * pw2 * 16
    feat = y2[:, :ph2 * pw2, :16].reshape(B, nfeat)
    feat = jnp.pad(feat, ((0, 0), (0, FC_K - nfeat)))
    logits = fc_head(feat, kp["fc1_w"], kp["fc1_b"],
                     kp["fc2_w"], kp["fc2_b"],
                     kp["fc3_w"], kp["fc3_b"])                  # (B, 128)
    return logits[:, :10]


if __name__ == "__main__":
    key = jax.random.PRNGKey(0)
    k_params, k_x = jax.random.split(key)
    params = prepare_params(init_params(k_params))
    # Smallest shape consistent with the module: 32x32 spatial (16*5*5 flatten).
    x = jax.random.normal(k_x, (2, 3, 32, 32), dtype=jnp.float32)

    out = net_forward(params, x)
    out = jax.block_until_ready(out)
    assert out.shape == (2, 10) and out.dtype == jnp.float32
    print("KERNEL_OK")
</pallas_src>

<mosaic_0001>
module attributes {stable_mosaic.version = 11 : i64} {
  func.func @_conv_relu_pool_kernel(%arg0: i32, %arg1: memref<2x4x208x128xbf16, #tpu.memory_space<vmem>>, %arg2: memref<128x128xbf16, #tpu.memory_space<vmem>>, %arg3: memref<1x128xf32, #tpu.memory_space<vmem>>, %arg4: memref<2x208x128xbf16, #tpu.memory_space<vmem>>) attributes {dimension_semantics = [#tpu.dimension_semantics<parallel>], iteration_bounds = array<i64: 1>, scalar_prefetch = 0 : i64, scratch_operands = 0 : i64, tpu.core_type = #tpu.core_type<tc>, window_params = [{transform_indices = @transform_0, window_bounds = array<i64: 2, 4, 208, 128>}, {pipeline_mode = #tpu.pipeline_mode<synchronous>, transform_indices = @transform_1, window_bounds = array<i64: 128, 128>}, {pipeline_mode = #tpu.pipeline_mode<synchronous>, transform_indices = @transform_2, window_bounds = array<i64: 1, 128>}, {transform_indices = @transform_3, window_bounds = array<i64: 2, 208, 128>}]} {
    %c0 = arith.constant 0 : index
    %c0_0 = arith.constant 0 : index
    %c0_1 = arith.constant 0 : index
    %c0_2 = arith.constant 0 : index
    %0 = vector.load %arg1[%c0, %c0_0, %c0_1, %c0_2] : memref<2x4x208x128xbf16, #tpu.memory_space<vmem>>, vector<2x4x208x128xbf16>
    %1 = vector.shape_cast %0 : vector<2x4x208x128xbf16> to vector<1664x128xbf16>
    %c0_3 = arith.constant 0 : index
    %c0_4 = arith.constant 0 : index
    %2 = vector.load %arg2[%c0_3, %c0_4] : memref<128x128xbf16, #tpu.memory_space<vmem>>, vector<128x128xbf16>
    %cst = arith.constant dense<0.000000e+00> : vector<1664x128xf32>
    %3 = tpu.matmul %1, %2, %cst {dimension_numbers = #tpu.dot_dimension_numbers<[1], [0], [0], [1], [0, 0, 1, 1], [], []>} : vector<1664x128xbf16>, vector<128x128xbf16>, vector<1664x128xf32> -> vector<1664x128xf32>
    %c0_5 = arith.constant 0 : index
    %c0_6 = arith.constant 0 : index
    %4 = vector.load %arg3[%c0_5, %c0_6] : memref<1x128xf32, #tpu.memory_space<vmem>>, vector<1x128xf32>
    %5 = vector.broadcast %4 : vector<1x128xf32> to vector<1664x128xf32>
    %6 = arith.addf %3, %5 : vector<1664x128xf32>
    %cst_7 = arith.constant 0.000000e+00 : f32
    %7 = vector.broadcast %cst_7 : f32 to vector<1664x128xf32>
    %8 = arith.maximumf %6, %7 : vector<1664x128xf32>
    %9 = vector.shape_cast %8 : vector<1664x128xf32> to vector<2x4x208x128xf32>
    %10 = vector.extract_strided_slice %9 {offsets = [0, 0, 0, 0], sizes = [2, 1, 208, 128], strides = [1, 1, 1, 1]} : vector<2x4x208x128xf32> to vector<2x1x208x128xf32>
    %11 = vector.shape_cast %10 : vector<2x1x208x128xf32> to vector<2x208x128xf32>
    %12 = vector.extract_strided_slice %9 {offsets = [0, 1, 0, 0], sizes = [2, 1, 208, 128], strides = [1, 1, 1, 1]} : vector<2x4x208x128xf32> to vector<2x1x208x128xf32>
    %13 = vector.shape_cast %12 : vector<2x1x208x128xf32> to vector<2x208x128xf32>
    %14 = arith.maximumf %11, %13 : vector<2x208x128xf32>
    %15 = vector.extract_strided_slice %9 {offsets = [0, 2, 0, 0], sizes = [2, 1, 208, 128], strides = [1, 1, 1, 1]} : vector<2x4x208x128xf32> to vector<2x1x208x128xf32>
    %16 = vector.shape_cast %15 : vector<2x1x208x128xf32> to vector<2x208x128xf32>
    %17 = vector.extract_strided_slice %9 {offsets = [0, 3, 0, 0], sizes = [2, 1, 208, 128], strides = [1, 1, 1, 1]} : vector<2x4x208x128xf32> to vector<2x1x208x128xf32>
    %18 = vector.shape_cast %17 : vector<2x1x208x128xf32> to vector<2x208x128xf32>
    %19 = arith.maximumf %16, %18 : vector<2x208x128xf32>
    %20 = arith.maximumf %14, %19 : vector<2x208x128xf32>
    %21 = arith.truncf %20 : vector<2x208x128xf32> to vector<2x208x128xbf16>
    %c0_8 = arith.constant 0 : index
    %c0_9 = arith.constant 0 : index
    %c0_10 = arith.constant 0 : index
    %22 = vector.load %arg4[%c0_8, %c0_9, %c0_10] : memref<2x208x128xbf16, #tpu.memory_space<vmem>>, vector<2x208x128xbf16>
    tpu.vector_store %arg4[%c0_8, %c0_9, %c0_10], %21 {strides = array<i32>} : memref<2x208x128xbf16, #tpu.memory_space<vmem>>, vector<2x208x128xbf16>,
    return
  }
  func.func @transform_0(%arg0: i32) -> (i32, i32, i32, i32) {
    %c0_i32 = arith.constant 0 : i32
    %c0_i32_0 = arith.constant 0 : i32
    %c0_i32_1 = arith.constant 0 : i32
    %c0_i32_2 = arith.constant 0 : i32
    return %arg0, %c0_i32, %c0_i32_0, %c0_i32_1 : i32, i32, i32, i32
  }
  func.func @transform_1(%arg0: i32) -> (i32, i32) {
    %c0_i32 = arith.constant 0 : i32
    %c0_i32_0 = arith.constant 0 : i32
    %c0_i32_1 = arith.constant 0 : i32
    return %c0_i32, %c0_i32_0 : i32, i32
  }
  func.func @transform_2(%arg0: i32) -> (i32, i32) {
    %c0_i32 = arith.constant 0 : i32
    %c0_i32_0 = arith.constant 0 : i32
    %c0_i32_1 = arith.constant 0 : i32
    return %c0_i32, %c0_i32_0 : i32, i32
  }
  func.func @transform_3(%arg0: i32) -> (i32, i32, i32) {
    %c0_i32 = arith.constant 0 : i32
    %c0_i32_0 = arith.constant 0 : i32
    %c0_i32_1 = arith.constant 0 : i32
    return %arg0, %c0_i32, %c0_i32_0 : i32, i32, i32
  }
}

module attributes {stable_mosaic.version = 11 : i64} {
  func.func @_conv_relu_pool_kernel(%arg0: i32, %arg1: memref<2x4x32x256xbf16, #tpu.memory_space<vmem>>, %arg2: memref<256x128xbf16, #tpu.memory_space<vmem>>, %arg3: memref<1x128xf32, #tpu.memory_space<vmem>>, %arg4: memref<2x32x128xbf16, #tpu.memory_space<vmem>>) attributes {dimension_semantics = [#tpu.dimension_semantics<parallel>], iteration_bounds = array<i64: 1>, scalar_prefetch = 0 : i64, scratch_operands = 0 : i64, tpu.core_type = #tpu.core_type<tc>, window_params = [{transform_indices = @transform_0, window_bounds = array<i64: 2, 4, 32, 256>}, {pipeline_mode = #tpu.pipeline_mode<synchronous>, transform_indices = @transform_1, window_bounds = array<i64: 256, 128>}, {pipeline_mode = #tpu.pipeline_mode<synchronous>, transform_indices = @transform_2, window_bounds = array<i64: 1, 128>}, {transform_indices = @transform_3, window_bounds = array<i64: 2, 32, 128>}]} {
    %c0 = arith.constant 0 : index
    %c0_0 = arith.constant 0 : index
    %c0_1 = arith.constant 0 : index
    %c0_2 = arith.constant 0 : index
    %0 = vector.load %arg1[%c0, %c0_0, %c0_1, %c0_2] : memref<2x4x32x256xbf16, #tpu.memory_space<vmem>>, vector<2x4x32x256xbf16>
    %1 = vector.shape_cast %0 : vector<2x4x32x256xbf16> to vector<256x256xbf16>
    %c0_3 = arith.constant 0 : index
    %c0_4 = arith.constant 0 : index
    %2 = vector.load %arg2[%c0_3, %c0_4] : memref<256x128xbf16, #tpu.memory_space<vmem>>, vector<256x128xbf16>
    %cst = arith.constant dense<0.000000e+00> : vector<256x128xf32>
    %3 = tpu.matmul %1, %2, %cst {dimension_numbers = #tpu.dot_dimension_numbers<[1], [0], [0], [1], [0, 0, 1, 1], [], []>} : vector<256x256xbf16>, vector<256x128xbf16>, vector<256x128xf32> -> vector<256x128xf32>
    %c0_5 = arith.constant 0 : index
    %c0_6 = arith.constant 0 : index
    %4 = vector.load %arg3[%c0_5, %c0_6] : memref<1x128xf32, #tpu.memory_space<vmem>>, vector<1x128xf32>
    %5 = vector.broadcast %4 : vector<1x128xf32> to vector<256x128xf32>
    %6 = arith.addf %3, %5 : vector<256x128xf32>
    %cst_7 = arith.constant 0.000000e+00 : f32
    %7 = vector.broadcast %cst_7 : f32 to vector<256x128xf32>
    %8 = arith.maximumf %6, %7 : vector<256x128xf32>
    %9 = vector.shape_cast %8 : vector<256x128xf32> to vector<2x4x32x128xf32>
    %10 = vector.extract_strided_slice %9 {offsets = [0, 0, 0, 0], sizes = [2, 1, 32, 128], strides = [1, 1, 1, 1]} : vector<2x4x32x128xf32> to vector<2x1x32x128xf32>
    %11 = vector.shape_cast %10 : vector<2x1x32x128xf32> to vector<2x32x128xf32>
    %12 = vector.extract_strided_slice %9 {offsets = [0, 1, 0, 0], sizes = [2, 1, 32, 128], strides = [1, 1, 1, 1]} : vector<2x4x32x128xf32> to vector<2x1x32x128xf32>
    %13 = vector.shape_cast %12 : vector<2x1x32x128xf32> to vector<2x32x128xf32>
    %14 = arith.maximumf %11, %13 : vector<2x32x128xf32>
    %15 = vector.extract_strided_slice %9 {offsets = [0, 2, 0, 0], sizes = [2, 1, 32, 128], strides = [1, 1, 1, 1]} : vector<2x4x32x128xf32> to vector<2x1x32x128xf32>
    %16 = vector.shape_cast %15 : vector<2x1x32x128xf32> to vector<2x32x128xf32>
    %17 = vector.extract_strided_slice %9 {offsets = [0, 3, 0, 0], sizes = [2, 1, 32, 128], strides = [1, 1, 1, 1]} : vector<2x4x32x128xf32> to vector<2x1x32x128xf32>
    %18 = vector.shape_cast %17 : vector<2x1x32x128xf32> to vector<2x32x128xf32>
    %19 = arith.maximumf %16, %18 : vector<2x32x128xf32>
    %20 = arith.maximumf %14, %19 : vector<2x32x128xf32>
    %21 = arith.truncf %20 : vector<2x32x128xf32> to vector<2x32x128xbf16>
    %c0_8 = arith.constant 0 : index
    %c0_9 = arith.constant 0 : index
    %c0_10 = arith.constant 0 : index
    %22 = vector.load %arg4[%c0_8, %c0_9, %c0_10] : memref<2x32x128xbf16, #tpu.memory_space<vmem>>, vector<2x32x128xbf16>
    tpu.vector_store %arg4[%c0_8, %c0_9, %c0_10], %21 {strides = array<i32>} : memref<2x32x128xbf16, #tpu.memory_space<vmem>>, vector<2x32x128xbf16>,
    return
  }
  func.func @transform_0(%arg0: i32) -> (i32, i32, i32, i32) {
    %c0_i32 = arith.constant 0 : i32
    %c0_i32_0 = arith.constant 0 : i32
    %c0_i32_1 = arith.constant 0 : i32
    %c0_i32_2 = arith.constant 0 : i32
    return %arg0, %c0_i32, %c0_i32_0, %c0_i32_1 : i32, i32, i32, i32
  }
  func.func @transform_1(%arg0: i32) -> (i32, i32) {
    %c0_i32 = arith.constant 0 : i32
    %c0_i32_0 = arith.constant 0 : i32
    %c0_i32_1 = arith.constant 0 : i32
    return %c0_i32, %c0_i32_0 : i32, i32
  }
  func.func @transform_2(%arg0: i32) -> (i32, i32) {
    %c0_i32 = arith.constant 0 : i32
    %c0_i32_0 = arith.constant 0 : i32
    %c0_i32_1 = arith.constant 0 : i32
    return %c0_i32, %c0_i32_0 : i32, i32
  }
  func.func @transform_3(%arg0: i32) -> (i32, i32, i32) {
    %c0_i32 = arith.constant 0 : i32
    %c0_i32_0 = arith.constant 0 : i32
    %c0_i32_1 = arith.constant 0 : i32
    return %arg0, %c0_i32, %c0_i32_0 : i32, i32, i32
  }
}

module attributes {stable_mosaic.version = 11 : i64} {
  func.func @_fc_fused_kernel(%arg0: i32, %arg1: memref<2x512xbf16, #tpu.memory_space<vmem>>, %arg2: memref<512x128xbf16, #tpu.memory_space<vmem>>, %arg3: memref<1x128xf32, #tpu.memory_space<vmem>>, %arg4: memref<128x128xbf16, #tpu.memory_space<vmem>>, %arg5: memref<1x128xf32, #tpu.memory_space<vmem>>, %arg6: memref<128x128xbf16, #tpu.memory_space<vmem>>, %arg7: memref<1x128xf32, #tpu.memory_space<vmem>>, %arg8: memref<2x128xf32, #tpu.memory_space<vmem>>) attributes {dimension_semantics = [#tpu.dimension_semantics<parallel>], iteration_bounds = array<i64: 1>, scalar_prefetch = 0 : i64, scratch_operands = 0 : i64, tpu.core_type = #tpu.core_type<tc>, window_params = [{transform_indices = @transform_0, window_bounds = array<i64: 2, 512>}, {pipeline_mode = #tpu.pipeline_mode<synchronous>, transform_indices = @transform_1, window_bounds = array<i64: 512, 128>}, {pipeline_mode = #tpu.pipeline_mode<synchronous>, transform_indices = @transform_2, window_bounds = array<i64: 1, 128>}, {pipeline_mode = #tpu.pipeline_mode<synchronous>, transform_indices = @transform_3, window_bounds = array<i64: 128, 128>}, {pipeline_mode = #tpu.pipeline_mode<synchronous>, transform_indices = @transform_4, window_bounds = array<i64: 1, 128>}, {pipeline_mode = #tpu.pipeline_mode<synchronous>, transform_indices = @transform_5, window_bounds = array<i64: 128, 128>}, {pipeline_mode = #tpu.pipeline_mode<synchronous>, transform_indices = @transform_6, window_bounds = array<i64: 1, 128>}, {transform_indices = @transform_7, window_bounds = array<i64: 2, 128>}]} {
    %c0 = arith.constant 0 : index
    %c0_0 = arith.constant 0 : index
    %0 = vector.load %arg1[%c0, %c0_0] : memref<2x512xbf16, #tpu.memory_space<vmem>>, vector<2x512xbf16>
    %c0_1 = arith.constant 0 : index
    %c0_2 = arith.constant 0 : index
    %1 = vector.load %arg2[%c0_1, %c0_2] : memref<512x128xbf16, #tpu.memory_space<vmem>>, vector<512x128xbf16>
    %cst = arith.constant dense<0.000000e+00> : vector<2x128xf32>
    %2 = tpu.matmul %0, %1, %cst {dimension_numbers = #tpu.dot_dimension_numbers<[1], [0], [0], [1], [0, 0, 1, 1], [], []>} : vector<2x512xbf16>, vector<512x128xbf16>, vector<2x128xf32> -> vector<2x128xf32>
    %c0_3 = arith.constant 0 : index
    %c0_4 = arith.constant 0 : index
    %3 = vector.load %arg3[%c0_3, %c0_4] : memref<1x128xf32, #tpu.memory_space<vmem>>, vector<1x128xf32>
    %4 = vector.broadcast %3 : vector<1x128xf32> to vector<2x128xf32>
    %5 = arith.addf %2, %4 : vector<2x128xf32>
    %cst_5 = arith.constant 0.000000e+00 : f32
    %6 = vector.broadcast %cst_5 : f32 to vector<2x128xf32>
    %7 = arith.maximumf %5, %6 : vector<2x128xf32>
    %8 = arith.truncf %7 : vector<2x128xf32> to vector<2x128xbf16>
    %c0_6 = arith.constant 0 : index
    %c0_7 = arith.constant 0 : index
    %9 = vector.load %arg4[%c0_6, %c0_7] : memref<128x128xbf16, #tpu.memory_space<vmem>>, vector<128x128xbf16>
    %cst_8 = arith.constant dense<0.000000e+00> : vector<2x128xf32>
    %10 = tpu.matmul %8, %9, %cst_8 {dimension_numbers = #tpu.dot_dimension_numbers<[1], [0], [0], [1], [0, 0, 1, 1], [], []>} : vector<2x128xbf16>, vector<128x128xbf16>, vector<2x128xf32> -> vector<2x128xf32>
    %c0_9 = arith.constant 0 : index
    %c0_10 = arith.constant 0 : index
    %11 = vector.load %arg5[%c0_9, %c0_10] : memref<1x128xf32, #tpu.memory_space<vmem>>, vector<1x128xf32>
    %12 = vector.broadcast %11 : vector<1x128xf32> to vector<2x128xf32>
    %13 = arith.addf %10, %12 : vector<2x128xf32>
    %cst_11 = arith.constant 0.000000e+00 : f32
    %14 = vector.broadcast %cst_11 : f32 to vector<2x128xf32>
    %15 = arith.maximumf %13, %14 : vector<2x128xf32>
    %16 = arith.truncf %15 : vector<2x128xf32> to vector<2x128xbf16>
    %c0_12 = arith.constant 0 : index
    %c0_13 = arith.constant 0 : index
    %17 = vector.load %arg6[%c0_12, %c0_13] : memref<128x128xbf16, #tpu.memory_space<vmem>>, vector<128x128xbf16>
    %cst_14 = arith.constant dense<0.000000e+00> : vector<2x128xf32>
    %18 = tpu.matmul %16, %17, %cst_14 {dimension_numbers = #tpu.dot_dimension_numbers<[1], [0], [0], [1], [0, 0, 1, 1], [], []>} : vector<2x128xbf16>, vector<128x128xbf16>, vector<2x128xf32> -> vector<2x128xf32>
    %c0_15 = arith.constant 0 : index
    %c0_16 = arith.constant 0 : index
    %19 = vector.load %arg7[%c0_15, %c0_16] : memref<1x128xf32, #tpu.memory_space<vmem>>, vector<1x128xf32>
    %20 = vector.broadcast %19 : vector<1x128xf32> to vector<2x128xf32>
    %21 = arith.addf %18, %20 : vector<2x128xf32>
    %c0_17 = arith.constant 0 : index
    %c0_18 = arith.constant 0 : index
    %22 = vector.load %arg8[%c0_17, %c0_18] : memref<2x128xf32, #tpu.memory_space<vmem>>, vector<2x128xf32>
    tpu.vector_store %arg8[%c0_17, %c0_18], %21 {strides = array<i32>} : memref<2x128xf32, #tpu.memory_space<vmem>>, vector<2x128xf32>,
    return
  }
  func.func @transform_0(%arg0: i32) -> (i32, i32) {
    %c0_i32 = arith.constant 0 : i32
    %c0_i32_0 = arith.constant 0 : i32
    return %arg0, %c0_i32 : i32, i32
  }
  func.func @transform_1(%arg0: i32) -> (i32, i32) {
    %c0_i32 = arith.constant 0 : i32
    %c0_i32_0 = arith.constant 0 : i32
    %c0_i32_1 = arith.constant 0 : i32
    return %c0_i32, %c0_i32_0 : i32, i32
  }
  func.func @transform_2(%arg0: i32) -> (i32, i32) {
    %c0_i32 = arith.constant 0 : i32
    %c0_i32_0 = arith.constant 0 : i32
    %c0_i32_1 = arith.constant 0 : i32
    return %c0_i32, %c0_i32_0 : i32, i32
  }
  func.func @transform_3(%arg0: i32) -> (i32, i32) {
    %c0_i32 = arith.constant 0 : i32
    %c0_i32_0 = arith.constant 0 : i32
    %c0_i32_1 = arith.constant 0 : i32
    return %c0_i32, %c0_i32_0 : i32, i32
  }
  func.func @transform_4(%arg0: i32) -> (i32, i32) {
    %c0_i32 = arith.constant 0 : i32
    %c0_i32_0 = arith.constant 0 : i32
    %c0_i32_1 = arith.constant 0 : i32
    return %c0_i32, %c0_i32_0 : i32, i32
  }
  func.func @transform_5(%arg0: i32) -> (i32, i32) {
    %c0_i32 = arith.constant 0 : i32
    %c0_i32_0 = arith.constant 0 : i32
    %c0_i32_1 = arith.constant 0 : i32
    return %c0_i32, %c0_i32_0 : i32, i32
  }
  func.func @transform_6(%arg0: i32) -> (i32, i32) {
    %c0_i32 = arith.constant 0 : i32
    %c0_i32_0 = arith.constant 0 : i32
    %c0_i32_1 = arith.constant 0 : i32
    return %c0_i32, %c0_i32_0 : i32, i32
  }
  func.func @transform_7(%arg0: i32) -> (i32, i32) {
    %c0_i32 = arith.constant 0 : i32
    %c0_i32_0 = arith.constant 0 : i32
    return %arg0, %c0_i32 : i32, i32
  }
}

</mosaic_0001>

<bundles_post_ra>
// kernel: net_forward.3
= control target key start
LH: loop header
LB: loop body
LE: loop exit
PB: predicated region body
PF: predicated region fallthrough
CT: control target
= control target key end

     0   :  { %s4620_s1 = inlined_call_operand.vmem [shape: bf16[128,128], index: 1, kind: input, shape index: {}]   ;;  %s4621_s0 = inlined_call_operand.vmem [shape: bf16[2,4,208,128], index: 0, kind: input, shape index: {}]   ;;  %s4622_s2 = inlined_call_operand.vmem [shape: f32[1,128], index: 2, kind: input, shape index: {}]   ;;  %s4623_s3 = inlined_call_operand.vmem [shape: bf16[2,208,128], index: 3, kind: output, shape index: {}]  }
   0x1   :  { %v3135_v0 = vld [vmem:[%s4620_s1 + $0x38] sm:$0xff]   ;;  %v3136_v1 = vld [vmem:[%s4620_s1 + $0x30] sm:$0xff]   ;;  %v3137_v2 = vld [vmem:[%s4620_s1 + $0x28] sm:$0xff]  }
   0x2   :  { %2895 = vmatprep.subr.bf16.mxu0 %v3135_v0  ;;  %3119 = vmatprep.subr.bf16.mxu1 %v3135_v0  ;;  %v3138_v3 = vld [vmem:[%s4620_s1 + $0x20] sm:$0xff]   ;;  %v3139_v6 = vld [vmem:[%s4620_s1 + $0x18] sm:$0xff]   ;;  %v3140_v7 = vld [vmem:[%s4620_s1 + $0x10] sm:$0xff]  }
   0x3   :  { %2896 = vmatpush3.bf16.msra.mxu0 %v3135_v0  ;;  %3127 = vmatpush3.bf16.msra.mxu1 %v3135_v0  ;;  %v3143_v4 = vld [vmem:[%s4621_s0] sm:$0xff]   ;;  %v3141_v8 = vld [vmem:[%s4620_s1 + $0x8] sm:$0xff]   ;;  %v3147_v12 = vld [vmem:[%s4621_s0 + $0x10] sm:$0xff]  }
   0x4   :  { %2897 = vmatprep.subr.bf16.mxu0 %v3136_v1  ;;  %3120 = vmatprep.subr.bf16.mxu1 %v3136_v1  ;;  %v3144_v5 = vld [vmem:[%s4621_s0 + $0x1a0] sm:$0xff]   ;;  %v3145_v10 = vld [vmem:[%s4621_s0 + $0x8] sm:$0xff]   ;;  %v3148_v13 = vld [vmem:[%s4621_s0 + $0x1b0] sm:$0xff]  }
   0x5   :  { %2911 = vmatprep.mubr.bf16.mxu0 %v3143_v4  ;;  %3015 = vmatprep.mubr.bf16.mxu1 %v3144_v5  ;;  %v3142_v9 = vld [vmem:[%s4620_s1] sm:$0xff]   ;;  %v3146_v11 = vld [vmem:[%s4621_s0 + $0x1a8] sm:$0xff]   ;;  %v3149_v14 = vld [vmem:[%s4621_s0 + $0x18] sm:$0xff]  }
   0x6   :  { %v3150_v15 = vld [vmem:[%s4621_s0 + $0x1b8] sm:$0xff]   ;;  %v3151_v16 = vld [vmem:[%s4621_s0 + $0x20] sm:$0xff]   ;;  %v3153_v18 = vld [vmem:[%s4621_s0 + $0x28] sm:$0xff]  }
   0x7   :  { %2898 = vmatpush3.bf16.msra.mxu0 %v3136_v1  ;;  %3128 = vmatpush3.bf16.msra.mxu1 %v3136_v1  ;;  %v3152_v17 = vld [vmem:[%s4621_s0 + $0x1c0] sm:$0xff]   ;;  %v3154_v19 = vld [vmem:[%s4621_s0 + $0x1c8] sm:$0xff]   ;;  %v3155_v20 = vld [vmem:[%s4621_s0 + $0x30] sm:$0xff]  }
   0x8   :  { %2899 = vmatprep.subr.bf16.mxu0 %v3137_v2  ;;  %3121 = vmatprep.subr.bf16.mxu1 %v3137_v2  ;;  %v3156_v21 = vld [vmem:[%s4621_s0 + $0x1d0] sm:$0xff]   ;;  %v3157_v22 = vld [vmem:[%s4621_s0 + $0x38] sm:$0xff]   ;;  %v3159_v24 = vld [vmem:[%s4621_s0 + $0x40] sm:$0xff]  }
   0x9   :  { %v3158_v23 = vld [vmem:[%s4621_s0 + $0x1d8] sm:$0xff]   ;;  %v3160_v25 = vld [vmem:[%s4621_s0 + $0x1e0] sm:$0xff]   ;;  %v3161_v26 = vld [vmem:[%s4621_s0 + $0x48] sm:$0xff]  }
   0xa   :  { %v3162_v27 = vld [vmem:[%s4621_s0 + $0x1e8] sm:$0xff]   ;;  %v3163_v28 = vld [vmem:[%s4621_s0 + $0x50] sm:$0xff]   ;;  %v3165_v30 = vld [vmem:[%s4621_s0 + $0x58] sm:$0xff]  }
   0xb   :  { %2900 = vmatpush3.bf16.msra.mxu0 %v3137_v2  ;;  %3129 = vmatpush3.bf16.msra.mxu1 %v3137_v2  ;;  %v3164_v29 = vld [vmem:[%s4621_s0 + $0x1f0] sm:$0xff]   ;;  %v3166_v31 = vld [vmem:[%s4621_s0 + $0x1f8] sm:$0xff]   ;;  %v3167_v32 = vld [vmem:[%s4621_s0 + $0x60] sm:$0xff]  }
   0xc   :  { %2901 = vmatprep.subr.bf16.mxu0 %v3138_v3  ;;  %3122 = vmatprep.subr.bf16.mxu1 %v3138_v3  ;;  %v3168_v33 = vld [vmem:[%s4621_s0 + $0x200] sm:$0xff]   ;;  %v3169_v34 = vld [vmem:[%s4621_s0 + $0x68] sm:$0xff]   ;;  %v3171_v36 = vld [vmem:[%s4621_s0 + $0x70] sm:$0xff]  }
   0xd   :  { %v3170_v35 = vld [vmem:[%s4621_s0 + $0x208] sm:$0xff]   ;;  %v3172_v37 = vld [vmem:[%s4621_s0 + $0x210] sm:$0xff]   ;;  %v3173_v38 = vld [vmem:[%s4621_s0 + $0x78] sm:$0xff]  }
   0xe   :  { %v3174_v39 = vld [vmem:[%s4621_s0 + $0x218] sm:$0xff]   ;;  %v3175_v40 = vld [vmem:[%s4621_s0 + $0x80] sm:$0xff]   ;;  %v3177_v42 = vld [vmem:[%s4621_s0 + $0x88] sm:$0xff]  }
   0xf   :  { %2902 = vmatpush3.bf16.msra.mxu0 %v3138_v3  ;;  %3130 = vmatpush3.bf16.msra.mxu1 %v3138_v3  ;;  %v3176_v41 = vld [vmem:[%s4621_s0 + $0x220] sm:$0xff]   ;;  %v3178_v43 = vld [vmem:[%s4621_s0 + $0x228] sm:$0xff]   ;;  %v3179_v44 = vld [vmem:[%s4621_s0 + $0x90] sm:$0xff]  }
  0x10   :  { %2903 = vmatprep.subr.bf16.mxu0 %v3139_v6  ;;  %3123 = vmatprep.subr.bf16.mxu1 %v3139_v6  ;;  %v3180_v45 = vld [vmem:[%s4621_s0 + $0x230] sm:$0xff]   ;;  %v3181_v46 = vld [vmem:[%s4621_s0 + $0x98] sm:$0xff]   ;;  %v3183_v48 = vld [vmem:[%s4621_s0 + $0xa0] sm:$0xff]  }
  0x11   :  { %v3182_v47 = vld [vmem:[%s4621_s0 + $0x238] sm:$0xff]   ;;  %v3184_v49 = vld [vmem:[%s4621_s0 + $0x240] sm:$0xff]   ;;  %v3185_v50 = vld [vmem:[%s4621_s0 + $0xa8] sm:$0xff]  }
  0x12   :  { %v3186_v51 = vld [vmem:[%s4621_s0 + $0x248] sm:$0xff]   ;;  %v3187_v52 = vld [vmem:[%s4621_s0 + $0xb0] sm:$0xff]   ;;  %v3189_v54 = vld [vmem:[%s4621_s0 + $0xb8] sm:$0xff]  }
  0x13   :  { %2904 = vmatpush3.bf16.msra.mxu0 %v3139_v6  ;;  %3131 = vmatpush3.bf16.msra.mxu1 %v3139_v6  ;;  %v3188_v53 = vld [vmem:[%s4621_s0 + $0x250] sm:$0xff]   ;;  %v3190_v55 = vld [vmem:[%s4621_s0 + $0x258] sm:$0xff]   ;;  %v3191_v56 = vld [vmem:[%s4621_s0 + $0xc0] sm:$0xff]  }
  0x14   :  { %2905 = vmatprep.subr.bf16.mxu0 %v3140_v7  ;;  %3124 = vmatprep.subr.bf16.mxu1 %v3140_v7  ;;  %v3192_v57 = vld [vmem:[%s4621_s0 + $0x260] sm:$0xff]   ;;  %v3193_v58 = vld [vmem:[%s4621_s0 + $0xc8] sm:$0xff]   ;;  %v3195_v60 = vld [vmem:[%s4621_s0 + $0xd0] sm:$0xff]  }
  0x15   :  { %v3194_v59 = vld [vmem:[%s4621_s0 + $0x268] sm:$0xff]   ;;  %v3196_v61 = vld [vmem:[%s4621_s0 + $0x270] sm:$0xff]   ;;  %v3197_v62 = vld [vmem:[%s4621_s0 + $0xd8] sm:$0xff]  }
  0x16   :  { %v3198_v63 = vld [vmem:[%s4621_s0 + $0x278] sm:$0xff]   ;;  %v3199_v0 = vld [vmem:[%s4621_s0 + $0xe0] sm:$0xff]   ;;  %v3201_v2 = vld [vmem:[%s4621_s0 + $0xe8] sm:$0xff]  }
  0x17   :  { %2906 = vmatpush3.bf16.msra.mxu0 %v3140_v7  ;;  %3132 = vmatpush3.bf16.msra.mxu1 %v3140_v7  ;;  %v3200_v1 = vld [vmem:[%s4621_s0 + $0x280] sm:$0xff]   ;;  %v3202_v3 = vld [vmem:[%s4621_s0 + $0x288] sm:$0xff]   ;;  %v3203_v4 = vld [vmem:[%s4621_s0 + $0xf0] sm:$0xff]  }
  0x18   :  { %2907 = vmatprep.subr.bf16.mxu0 %v3141_v8  ;;  %3125 = vmatprep.subr.bf16.mxu1 %v3141_v8  ;;  %v3204_v5 = vld [vmem:[%s4621_s0 + $0x290] sm:$0xff]   ;;  %v3205_v6 = vld [vmem:[%s4621_s0 + $0xf8] sm:$0xff]  }
  0x19   :  { %v3206_v7 = vld [vmem:[%s4621_s0 + $0x298] sm:$0xff]  }
  0x1b   :  { %2908 = vmatpush3.bf16.msra.mxu0 %v3141_v8  ;;  %3133 = vmatpush3.bf16.msra.mxu1 %v3141_v8  ;;  %v3207_v8 = vld [vmem:[%s4621_s0 + $0x100] sm:$0xff]  }
  0x1c   :  { %2909 = vmatprep.subr.bf16.mxu0 %v3142_v9  ;;  %3126 = vmatprep.subr.bf16.mxu1 %v3142_v9 }
  0x1f   :  { %2910 = vmatpush3.bf16.msra.mxu0 %v3142_v9  ;;  %3134 = vmatpush3.bf16.msra.mxu1 %v3142_v9  ;;  %v3208_v9 = vld [vmem:[%s4621_s0 + $0x2a0] sm:$0xff]  }
  0x22   :  { %2912 = vmatmul.mubr.bf16.vlgmr.msra.gmra.mxu0 %v3145_v10  ;;  %3016 = vmatmul.mubr.bf16.vlgmr.msra.gmra.mxu1 %v3146_v11  ;;  %v3209_v10 = vld [vmem:[%s4621_s0 + $0x108] sm:$0xff]  }
  0x23   :  { %2915 = vmatprep.mubr.bf16.mxu0 %v3147_v12  ;;  %3019 = vmatprep.mubr.bf16.mxu1 %v3148_v13  ;;  %v3210_v11 = vld [vmem:[%s4621_s0 + $0x2a8] sm:$0xff]   ;;  %v3211_v12 = vld [vmem:[%s4621_s0 + $0x110] sm:$0xff]  }
  0x24   :  { %v3212_v13 = vld [vmem:[%s4621_s0 + $0x2b0] sm:$0xff]  }
  0x2a   :  { %2916 = vmatmul.mubr.bf16.gmra.mxu0 %v3149_v14  ;;  %3020 = vmatmul.mubr.bf16.gmra.mxu1 %v3150_v15  ;;  %v3213_v14 = vld [vmem:[%s4621_s0 + $0x118] sm:$0xff]  }
  0x2b   :  { %2919 = vmatprep.mubr.bf16.mxu0 %v3151_v16  ;;  %3023 = vmatprep.mubr.bf16.mxu1 %v3152_v17  ;;  %v3214_v15 = vld [vmem:[%s4621_s0 + $0x2b8] sm:$0xff]   ;;  %v3215_v16 = vld [vmem:[%s4621_s0 + $0x120] sm:$0xff]  }
  0x2c   :  { %v3216_v17 = vld [vmem:[%s4621_s0 + $0x2c0] sm:$0xff]  }
  0x32   :  { %2920 = vmatmul.mubr.bf16.gmra.mxu0 %v3153_v18  ;;  %3024 = vmatmul.mubr.bf16.gmra.mxu1 %v3154_v19  ;;  %v3217_v18 = vld [vmem:[%s4621_s0 + $0x128] sm:$0xff]  }
  0x33   :  { %2923 = vmatprep.mubr.bf16.mxu0 %v3155_v20  ;;  %3027 = vmatprep.mubr.bf16.mxu1 %v3156_v21  ;;  %v3218_v19 = vld [vmem:[%s4621_s0 + $0x2c8] sm:$0xff]   ;;  %v3219_v20 = vld [vmem:[%s4621_s0 + $0x130] sm:$0xff]  }
  0x34   :  { %v3220_v21 = vld [vmem:[%s4621_s0 + $0x2d0] sm:$0xff]  }
  0x3a   :  { %2924 = vmatmul.mubr.bf16.gmra.mxu0 %v3157_v22  ;;  %3028 = vmatmul.mubr.bf16.gmra.mxu1 %v3158_v23  ;;  %v3221_v22 = vld [vmem:[%s4621_s0 + $0x138] sm:$0xff]  }
  0x3b   :  { %2927 = vmatprep.mubr.bf16.mxu0 %v3159_v24  ;;  %3031 = vmatprep.mubr.bf16.mxu1 %v3160_v25  ;;  %v3222_v23 = vld [vmem:[%s4621_s0 + $0x2d8] sm:$0xff]   ;;  %v3223_v24 = vld [vmem:[%s4621_s0 + $0x140] sm:$0xff]  }
  0x3c   :  { %v3224_v25 = vld [vmem:[%s4621_s0 + $0x2e0] sm:$0xff]  }
  0x42   :  { %2928 = vmatmul.mubr.bf16.gmra.mxu0 %v3161_v26  ;;  %3032 = vmatmul.mubr.bf16.gmra.mxu1 %v3162_v27  ;;  %v3225_v26 = vld [vmem:[%s4621_s0 + $0x148] sm:$0xff]  }
  0x43   :  { %2931 = vmatprep.mubr.bf16.mxu0 %v3163_v28  ;;  %3035 = vmatprep.mubr.bf16.mxu1 %v3164_v29  ;;  %v3226_v27 = vld [vmem:[%s4621_s0 + $0x2e8] sm:$0xff]   ;;  %v3227_v28 = vld [vmem:[%s4621_s0 + $0x150] sm:$0xff]  }
  0x44   :  { %v3228_v29 = vld [vmem:[%s4621_s0 + $0x2f0] sm:$0xff]  }
  0x4a   :  { %2932 = vmatmul.mubr.bf16.gmra.mxu0 %v3165_v30  ;;  %3036 = vmatmul.mubr.bf16.gmra.mxu1 %v3166_v31  ;;  %v3229_v30 = vld [vmem:[%s4621_s0 + $0x158] sm:$0xff]  }
  0x4b   :  { %2935 = vmatprep.mubr.bf16.mxu0 %v3167_v32  ;;  %3039 = vmatprep.mubr.bf16.mxu1 %v3168_v33  ;;  %v3230_v31 = vld [vmem:[%s4621_s0 + $0x2f8] sm:$0xff]   ;;  %v3231_v32 = vld [vmem:[%s4621_s0 + $0x160] sm:$0xff]  }
  0x4c   :  { %v3232_v33 = vld [vmem:[%s4621_s0 + $0x300] sm:$0xff]  }
  0x52   :  { %2936 = vmatmul.mubr.bf16.gmra.mxu0 %v3169_v34  ;;  %3040 = vmatmul.mubr.bf16.gmra.mxu1 %v3170_v35  ;;  %v3233_v34 = vld [vmem:[%s4621_s0 + $0x168] sm:$0xff]  }
  0x53   :  { %2939 = vmatprep.mubr.bf16.mxu0 %v3171_v36  ;;  %3043 = vmatprep.mubr.bf16.mxu1 %v3172_v37  ;;  %v3234_v35 = vld [vmem:[%s4621_s0 + $0x308] sm:$0xff]   ;;  %v3235_v36 = vld [vmem:[%s4621_s0 + $0x170] sm:$0xff]  }
  0x54   :  { %v3236_v37 = vld [vmem:[%s4621_s0 + $0x310] sm:$0xff]  }
  0x5a   :  { %2940 = vmatmul.mubr.bf16.gmra.mxu0 %v3173_v38  ;;  %3044 = vmatmul.mubr.bf16.gmra.mxu1 %v3174_v39  ;;  %v3237_v38 = vld [vmem:[%s4621_s0 + $0x178] sm:$0xff]  }
  0x5b   :  { %2943 = vmatprep.mubr.bf16.mxu0 %v3175_v40  ;;  %3047 = vmatprep.mubr.bf16.mxu1 %v3176_v41  ;;  %v3238_v39 = vld [vmem:[%s4621_s0 + $0x318] sm:$0xff]   ;;  %v3239_v40 = vld [vmem:[%s4621_s0 + $0x180] sm:$0xff]  }
  0x5c   :  { %v3240_v41 = vld [vmem:[%s4621_s0 + $0x320] sm:$0xff]  }
  0x62   :  { %2944 = vmatmul.mubr.bf16.gmra.mxu0 %v3177_v42  ;;  %3048 = vmatmul.mubr.bf16.gmra.mxu1 %v3178_v43  ;;  %v3241_v42 = vld [vmem:[%s4621_s0 + $0x188] sm:$0xff]  }
  0x63   :  { %2947 = vmatprep.mubr.bf16.mxu0 %v3179_v44  ;;  %3051 = vmatprep.mubr.bf16.mxu1 %v3180_v45  ;;  %v3242_v43 = vld [vmem:[%s4621_s0 + $0x328] sm:$0xff]   ;;  %v3243_v44 = vld [vmem:[%s4621_s0 + $0x190] sm:$0xff]  }
  0x64   :  { %v3244_v45 = vld [vmem:[%s4621_s0 + $0x330] sm:$0xff]  }
  0x6a   :  { %2948 = vmatmul.mubr.bf16.gmra.mxu0 %v3181_v46  ;;  %3052 = vmatmul.mubr.bf16.gmra.mxu1 %v3182_v47 }
  0x6b   :  { %2951 = vmatprep.mubr.bf16.mxu0 %v3183_v48  ;;  %3055 = vmatprep.mubr.bf16.mxu1 %v3184_v49 }
  0x72   :  { %2952 = vmatmul.mubr.bf16.gmra.mxu0 %v3185_v50  ;;  %3056 = vmatmul.mubr.bf16.gmra.mxu1 %v3186_v51 }
  0x73   :  { %2955 = vmatprep.mubr.bf16.mxu0 %v3187_v52  ;;  %3059 = vmatprep.mubr.bf16.mxu1 %v3188_v53  ;;  %v3245_v52 = vld [vmem:[%s4621_s0 + $0x198] sm:$0xff]  }
  0x74   :  { %v3246_v53 = vld [vmem:[%s4621_s0 + $0x338] sm:$0xff]  }
  0x7a   :  { %2956 = vmatmul.mubr.bf16.gmra.mxu0 %v3189_v54  ;;  %3060 = vmatmul.mubr.bf16.gmra.mxu1 %v3190_v55 }
  0x7b   :  { %2959 = vmatprep.mubr.bf16.mxu0 %v3191_v56  ;;  %3063 = vmatprep.mubr.bf16.mxu1 %v3192_v57 }
  0x82   :  { %2960 = vmatmul.mubr.bf16.gmra.mxu0 %v3193_v58  ;;  %3064 = vmatmul.mubr.bf16.gmra.mxu1 %v3194_v59 }
  0x83   :  { %2963 = vmatprep.mubr.bf16.mxu0 %v3195_v60  ;;  %3067 = vmatprep.mubr.bf16.mxu1 %v3196_v61 }
  0x8a   :  { %2964 = vmatmul.mubr.bf16.gmra.mxu0 %v3197_v62  ;;  %3068 = vmatmul.mubr.bf16.gmra.mxu1 %v3198_v63 }
  0x8b   :  { %2967 = vmatprep.mubr.bf16.mxu0 %v3199_v0  ;;  %3071 = vmatprep.mubr.bf16.mxu1 %v3200_v1 }
  0x92   :  { %2968 = vmatmul.mubr.bf16.gmra.mxu0 %v3201_v2  ;;  %3072 = vmatmul.mubr.bf16.gmra.mxu1 %v3202_v3 }
  0x93   :  { %2971 = vmatprep.mubr.bf16.mxu0 %v3203_v4  ;;  %3075 = vmatprep.mubr.bf16.mxu1 %v3204_v5 }
  0x9a   :  { %2972 = vmatmul.mubr.bf16.gmra.mxu0 %v3205_v6  ;;  %3076 = vmatmul.mubr.bf16.gmra.mxu1 %v3206_v7 }
  0x9b   :  { %2975 = vmatprep.mubr.bf16.mxu0 %v3207_v8  ;;  %3079 = vmatprep.mubr.bf16.mxu1 %v3208_v9 }
  0xa2   :  { %2976 = vmatmul.mubr.bf16.gmra.mxu0 %v3209_v10  ;;  %3080 = vmatmul.mubr.bf16.gmra.mxu1 %v3210_v11 }
  0xa3   :  { %2979 = vmatprep.mubr.bf16.mxu0 %v3211_v12  ;;  %3083 = vmatprep.mubr.bf16.mxu1 %v3212_v13 }
  0xaa   :  { %2980 = vmatmul.mubr.bf16.gmra.mxu0 %v3213_v14  ;;  %3084 = vmatmul.mubr.bf16.gmra.mxu1 %v3214_v15 }
  0xab   :  { %2983 = vmatprep.mubr.bf16.mxu0 %v3215_v16  ;;  %3087 = vmatprep.mubr.bf16.mxu1 %v3216_v17 }
  0xb2   :  { %2984 = vmatmul.mubr.bf16.gmra.mxu0 %v3217_v18  ;;  %3088 = vmatmul.mubr.bf16.gmra.mxu1 %v3218_v19 }
  0xb3   :  { %2987 = vmatprep.mubr.bf16.mxu0 %v3219_v20  ;;  %3091 = vmatprep.mubr.bf16.mxu1 %v3220_v21 }
  0xba   :  { %2988 = vmatmul.mubr.bf16.gmra.mxu0 %v3221_v22  ;;  %3092 = vmatmul.mubr.bf16.gmra.mxu1 %v3222_v23  ;;  %v3647_v22 = vld [vmem:[%s4622_s2] ss:$0 sm:$0xff] }
  0xbb   :  { %2991 = vmatprep.mubr.bf16.mxu0 %v3223_v24  ;;  %3095 = vmatprep.mubr.bf16.mxu1 %v3224_v25 }
  0xc2   :  { %2992 = vmatmul.mubr.bf16.gmra.mxu0 %v3225_v26  ;;  %3096 = vmatmul.mubr.bf16.gmra.mxu1 %v3226_v27 }
  0xc3   :  { %2995 = vmatprep.mubr.bf16.mxu0 %v3227_v28  ;;  %3099 = vmatprep.mubr.bf16.mxu1 %v3228_v29 }
  0xca   :  { %2996 = vmatmul.mubr.bf16.gmra.mxu0 %v3229_v30  ;;  %3100 = vmatmul.mubr.bf16.gmra.mxu1 %v3230_v31 }
  0xcb   :  { %2999 = vmatprep.mubr.bf16.mxu0 %v3231_v32  ;;  %3103 = vmatprep.mubr.bf16.mxu1 %v3232_v33 }
  0xd2   :  { %3000 = vmatmul.mubr.bf16.gmra.mxu0 %v3233_v34  ;;  %3104 = vmatmul.mubr.bf16.gmra.mxu1 %v3234_v35 }
  0xd3   :  { %3003 = vmatprep.mubr.bf16.mxu0 %v3235_v36  ;;  %3107 = vmatprep.mubr.bf16.mxu1 %v3236_v37 }
  0xda   :  { %3004 = vmatmul.mubr.bf16.gmra.mxu0 %v3237_v38  ;;  %3108 = vmatmul.mubr.bf16.gmra.mxu1 %v3238_v39 }
  0xdb   :  { %3007 = vmatprep.mubr.bf16.mxu0 %v3239_v40  ;;  %3111 = vmatprep.mubr.bf16.mxu1 %v3240_v41 }
  0xe2   :  { %v2913_v46 = vpop.f32.mrf.mxu0  ;;  %3008 = vmatmul.mubr.bf16.gmra.mxu0 %v3241_v42  ;;  %v3017_v47 = vpop.f32.mrf.mxu1  ;;  %3112 = vmatmul.mubr.bf16.gmra.mxu1 %v3242_v43 }
  0xe3   :  { %3011 = vmatprep.mubr.bf16.mxu0 %v3243_v44  ;;  %3115 = vmatprep.mubr.bf16.mxu1 %v3244_v45  ;;  %v3654_v25 = vadd.f32 %v2913_v46, %v3647_v22  ;;  %v3657_v26 = vadd.f32 %v3017_v47, %v3647_v22 }
  0xe4   :  { %v952_v48 = vpop.f32.mrf.mxu0  ;;  %v1368_v49 = vpop.f32.mrf.mxu1 }
  0xe5   :  { %v953_v29 = vadd.f32 %v3647_v22, %v952_v48  ;;  %v1369_v30 = vadd.f32 %v3647_v22, %v1368_v49 }
  0xe6   :  { %v2914_v50 = vpop.f32.mrf.mxu0  ;;  %v3018_v51 = vpop.f32.mrf.mxu1 }
  0xe7   :  { %v3666_v31 = vadd.f32 %v2914_v50, %v3647_v22  ;;  %v3669_v32 = vadd.f32 %v3018_v51, %v3647_v22  ;;  %v1783_v45 = vmax.f32 %v953_v29, 0.0  ;;  %v1887_v46 = vmax.f32 %v1369_v30, 0.0 }
  0xe8   :  { %v955_v54 = vpop.f32.mrf.mxu0  ;;  %v1371_v55 = vpop.f32.mrf.mxu1 }
  0xe9   :  { %v3672_v33 = vadd.f32 %v3647_v22, %v955_v54  ;;  %v3675_v34 = vadd.f32 %v3647_v22, %v1371_v55 }
  0xea   :  { %v2917_v56 = vpop.f32.mrf.mxu0  ;;  %3012 = vmatmul.mubr.bf16.gmra.mxu0 %v3245_v52  ;;  %v3021_v57 = vpop.f32.mrf.mxu1  ;;  %3116 = vmatmul.mubr.bf16.gmra.mxu1 %v3246_v53 }
  0xeb   :  { %v3682_v37 = vadd.f32 %v2917_v56, %v3647_v22  ;;  %v3685_v38 = vadd.f32 %v3021_v57, %v3647_v22  ;;  %v1784_v51 = vmax.f32 %v3672_v33, 0.0  ;;  %v1888_v52 = vmax.f32 %v3675_v34, 0.0 }
  0xec   :  { %v968_v58 = vpop.f32.mrf.mxu0  ;;  %v1384_v59 = vpop.f32.mrf.mxu1 }
  0xed   :  { %v3688_v39 = vadd.f32 %v3647_v22, %v968_v58  ;;  %v3691_v40 = vadd.f32 %v3647_v22, %v1384_v59 }
  0xee   :  { %v2918_v60 = vpop.f32.mrf.mxu0  ;;  %v3022_v61 = vpop.f32.mrf.mxu1 }
  0xef   :  { %v3700_v47 = vadd.f32 %v2918_v60, %v3647_v22  ;;  %v3703_v48 = vadd.f32 %v3022_v61, %v3647_v22 }
  0xf0   :  { %v971_v62 = vpop.f32.mrf.mxu0  ;;  %v1387_v63 = vpop.f32.mrf.mxu1 }
  0xf1   :  { %v3718_v59 = vadd.f32 %v3647_v22, %v971_v62  ;;  %v3721_v60 = vadd.f32 %v3647_v22, %v1387_v63 }
  0xf2   :  { %v2921_v0 = vpop.f32.mrf.mxu0  ;;  %v3025_v1 = vpop.f32.mrf.mxu1 }
  0xf3   :  { %v3724_v61 = vadd.f32 %v2921_v0, %v3647_v22  ;;  %v3727_v29 = vadd.f32 %v3025_v1, %v3647_v22 }
  0xf4   :  { %v3604_v2 = vpop.f32.mrf.mxu0  ;;  %v3606_v3 = vpop.f32.mrf.mxu1 }
  0xf5   :  { %v3735_v63 = vadd.f32 %v3647_v22, %v3604_v2  ;;  %v3739_v0 = vadd.f32 %v3647_v22, %v3606_v3 }
  0xf6   :  { %v3608_v4 = vpop.f32.mrf.mxu0  ;;  %v3610_v5 = vpop.f32.mrf.mxu1 }
  0xf7   :  { %v3743_v1 = vadd.f32 %v3608_v4, %v3647_v22  ;;  %v3747_v34 = vadd.f32 %v3610_v5, %v3647_v22 }
  0xf8   :  { %v3612_v6 = vpop.f32.mrf.mxu0  ;;  %v3614_v7 = vpop.f32.mrf.mxu1 }
  0xf9   :  { %v3755_v2 = vadd.f32 %v3647_v22, %v3612_v6  ;;  %v3759_v3 = vadd.f32 %v3647_v22, %v3614_v7 }
  0xfa   :  { %v3616_v8 = vpop.f32.mrf.mxu0  ;;  %v3618_v9 = vpop.f32.mrf.mxu1 }
  0xfb   :  { %v3767_v6 = vadd.f32 %v3616_v8, %v3647_v22  ;;  %v3771_v7 = vadd.f32 %v3618_v9, %v3647_v22 }
  0xfc   :  { %v3620_v10 = vpop.f32.mrf.mxu0  ;;  %v3622_v11 = vpop.f32.mrf.mxu1 }
  0xfe   :  { %v3624_v12 = vpop.f32.mrf.mxu0  ;;  %v3626_v13 = vpop.f32.mrf.mxu1 }
 0x100   :  { %v3628_v14 = vpop.f32.mrf.mxu0  ;;  %v3630_v15 = vpop.f32.mrf.mxu1 }
 0x102   :  { %v3632_v16 = vpop.f32.mrf.mxu0  ;;  %v3634_v17 = vpop.f32.mrf.mxu1 }
 0x104   :  { %v3636_v18 = vpop.f32.mrf.mxu0  ;;  %v3638_v19 = vpop.f32.mrf.mxu1 }
 0x106   :  { %v3640_v20 = vpop.f32.mrf.mxu0  ;;  %v3642_v21 = vpop.f32.mrf.mxu1 }
 0x108   :  { %v3649_v23 = vpop.f32.mrf.mxu0  ;;  %v3651_v24 = vpop.f32.mrf.mxu1 }
 0x10a   :  { %v3659_v27 = vpop.f32.mrf.mxu0  ;;  %v3661_v28 = vpop.f32.mrf.mxu1 }
 0x10c   :  { %v3677_v35 = vpop.f32.mrf.mxu0  ;;  %v3679_v36 = vpop.f32.mrf.mxu1 }
 0x10e   :  { %v3695_v43 = vpop.f32.mrf.mxu0  ;;  %v3697_v44 = vpop.f32.mrf.mxu1 }
 0x110   :  { %v3709_v53 = vpop.f32.mrf.mxu0  ;;  %v3711_v54 = vpop.f32.mrf.mxu1 }
 0x112   :  { %v2937_v30 = vpop.f32.mrf.mxu0  ;;  %v3041_v33 = vpop.f32.mrf.mxu1 }
 0x113   :  { %v1057_v55 = vadd.f32 %v2937_v30, %v3647_v22  ;;  %v1473_v62 = vadd.f32 %v3041_v33, %v3647_v22 }
 0x114   :  { %v3749_v56 = vpop.f32.mrf.mxu0  ;;  %v3751_v30 = vpop.f32.mrf.mxu1 }
 0x115   :  { %4644 = vst [vmem:[#allocation2_spill] sm:$0xff] %v3751_v30  ;;  %v1809_v33 = vmax.f32 %v1057_v55, 0.0  ;;  %v1913_v50 = vmax.f32 %v1473_v62, 0.0 }
 0x116   :  { %v2938_v41 = vpop.f32.mrf.mxu0  ;;  %v3042_v58 = vpop.f32.mrf.mxu1 }
 0x117   :  { %v3773_v55 = vmax.f32 %v1783_v45, %v1809_v33  ;;  %v3775_v62 = vmax.f32 %v1887_v46, %v1913_v50  ;;  %v1060_v42 = vadd.f32 %v2938_v41, %v3647_v22  ;;  %v1476_v4 = vadd.f32 %v3042_v58, %v3647_v22 }
 0x118   :  { %v3781_v57 = vpop.f32.mrf.mxu0  ;;  %v3783_v8 = vpop.f32.mrf.mxu1  ;;  %v3791_v50 = vadd.f32 %v3647_v22, %v3620_v10  ;;  %v3795_v41 = vadd.f32 %v3647_v22, %v3622_v11  ;;  %v3803_v10 = vadd.f32 %v3624_v12, %v3647_v22  ;;  %v3807_v11 = vadd.f32 %v3626_v13, %v3647_v22 }
 0x119   :  { %4645 = vst [vmem:[#allocation3_spill] sm:$0xff] %v3773_v55  ;;  %4646 = vst [vmem:[#allocation4_spill] sm:$0xff] %v3775_v62  ;;  %v1810_v58 = vmax.f32 %v1060_v42, 0.0  ;;  %v1914_v33 = vmax.f32 %v1476_v4, 0.0  ;;  %v3819_v13 = vadd.f32 %v3647_v22, %v3628_v14 }
 0x11a   :  { %4647 = vst [vmem:[#allocation5_spill] sm:$0xff] %v3781_v57  ;;  %4648 = vst [vmem:[#allocation6_spill] sm:$0xff] %v3783_v8  ;;  %v2941_v5 = vpop.f32.mrf.mxu0  ;;  %v3045_v49 = vpop.f32.mrf.mxu1 }
 0x11b   :  { %v1073_v45 = vadd.f32 %v2941_v5, %v3647_v22  ;;  %v1489_v46 = vadd.f32 %v3045_v49, %v3647_v22  ;;  %v3809_v42 = vmax.f32 %v1784_v51, %v1810_v58  ;;  %v3811_v4 = vmax.f32 %v1888_v52, %v1914_v33 }
 0x11c   :  { %v1064_v62 = vpop.f32.mrf.mxu0  ;;  %v1480_v30 = vpop.f32.mrf.mxu1  ;;  %v3823_v51 = vadd.f32 %v3647_v22, %v3630_v15 }
 0x11d   :  { %4649 = vst [vmem:[#allocation7_spill] sm:$0xff] %v3809_v42  ;;  %4650 = vst [vmem:[#allocation8_spill] sm:$0xff] %v3811_v4  ;;  %v1813_v55 = vmax.f32 %v1073_v45, 0.0  ;;  %v1917_v9 = vmax.f32 %v1489_v46, 0.0  ;;  %v1065_v5 = vadd.f32 %v3647_v22, %v1064_v62  ;;  %v1481_v49 = vadd.f32 %v3647_v22, %v1480_v30 }
 0x11e   :  { %v2942_v52 = vpop.f32.mrf.mxu0  ;;  %v3046_v58 = vpop.f32.mrf.mxu1  ;;  %v4651_v45 = vmax.f32 %v3688_v39, 0.0  ;;  %v4652_v30 = vmax.f32 %v3691_v40, 0.0  ;;  %v4654_v39 = vmax.f32 %v3654_v25, 0.0  ;;  %v4655_v40 = vmax.f32 %v3657_v26, 0.0 }
 0x11f   :  { %v1811_v33 = vmax.f32 %v1065_v5, 0.0  ;;  %v1915_v12 = vmax.f32 %v1481_v49, 0.0  ;;  %v1076_v4 = vadd.f32 %v2942_v52, %v3647_v22  ;;  %v1492_v15 = vadd.f32 %v3046_v58, %v3647_v22 }
 0x120   :  { %v3827_v46 = vmax.f32 %v4651_v45, %v1813_v55  ;;  %v3831_v62 = vmax.f32 %v4652_v30, %v1917_v9  ;;  %v1067_v42 = vpop.f32.mrf.mxu0  ;;  %v1483_v57 = vpop.f32.mrf.mxu1 }
 0x121   :  { %v3839_v55 = vmax.f32 %v4654_v39, %v1811_v33  ;;  %v3843_v9 = vmax.f32 %v4655_v40, %v1915_v12  ;;  %v1068_v5 = vadd.f32 %v3647_v22, %v1067_v42  ;;  %v1484_v49 = vadd.f32 %v3647_v22, %v1483_v57 }
 0x122   :  { %4653 = vst [vmem:[#allocation9_spill] sm:$0xff] %v3831_v62  ;;  %v1814_v30 = vmax.f32 %v1076_v4, 0.0  ;;  %v1918_v58 = vmax.f32 %v1492_v15, 0.0  ;;  %v2945_v14 = vpop.f32.mrf.mxu0  ;;  %v3049_v8 = vpop.f32.mrf.mxu1  ;;  %v3853_v12 = vadd.f32 %v3632_v16, %v3647_v22  ;;  %v3857_v57 = vadd.f32 %v3634_v17, %v3647_v22 }
 0x123   :  { %v1812_v62 = vmax.f32 %v1068_v5, 0.0  ;;  %v1916_v25 = vmax.f32 %v1484_v49, 0.0  ;;  %v1089_v33 = vadd.f32 %v2945_v14, %v3647_v22  ;;  %v1505_v26 = vadd.f32 %v3049_v8, %v3647_v22 }
 0x124   :  { %v4656_v42 = vmax.f32 %v3718_v59, 0.0  ;;  %v4657_v15 = vmax.f32 %v3721_v60, 0.0  ;;  %v1080_v40 = vpop.f32.mrf.mxu0  ;;  %v1496_v14 = vpop.f32.mrf.mxu1  ;;  %v4658_v8 = vmax.f32 %v3666_v31, 0.0  ;;  %v4659_v16 = vmax.f32 %v3669_v32, 0.0 }
 0x125   :  { %v1817_v17 = vmax.f32 %v1089_v33, 0.0  ;;  %v1921_v52 = vmax.f32 %v1505_v26, 0.0  ;;  %v3877_v59 = vadd.f32 %v3647_v22, %v3636_v18  ;;  %v3881_v60 = vadd.f32 %v3647_v22, %v3638_v19 }
 0x126   :  { %v3861_v4 = vmax.f32 %v4656_v42, %v1814_v30  ;;  %v3865_v39 = vmax.f32 %v4657_v15, %v1918_v58  ;;  %v3869_v5 = vmax.f32 %v4658_v8, %v1812_v62  ;;  %v3873_v49 = vmax.f32 %v4659_v16, %v1916_v25  ;;  %v2946_v62 = vpop.f32.mrf.mxu0  ;;  %v3050_v58 = vpop.f32.mrf.mxu1 }
 0x127   :  { %v1081_v30 = vadd.f32 %v3647_v22, %v1080_v40  ;;  %v1497_v31 = vadd.f32 %v3647_v22, %v1496_v14  ;;  %v4660_v32 = vmax.f32 %v3735_v63, 0.0  ;;  %v4661_v33 = vmax.f32 %v3739_v0, 0.0 }
 0x128   :  { %v1092_v18 = vadd.f32 %v2946_v62, %v3647_v22  ;;  %v1508_v42 = vadd.f32 %v3050_v58, %v3647_v22  ;;  %v1083_v8 = vpop.f32.mrf.mxu0  ;;  %v1499_v16 = vpop.f32.mrf.mxu1  ;;  %v4662_v58 = vmax.f32 %v3682_v37, 0.0  ;;  %v3919_v37 = vadd.f32 %v3640_v20, %v3647_v22 }
 0x129   :  { %v3887_v25 = vmax.f32 %v4660_v32, %v1817_v17  ;;  %v3891_v26 = vmax.f32 %v4661_v33, %v1921_v52  ;;  %v1815_v40 = vmax.f32 %v1081_v30, 0.0  ;;  %v1919_v14 = vmax.f32 %v1497_v31, 0.0 }
 0x12a   :  { %v1818_v45 = vmax.f32 %v1092_v18, 0.0  ;;  %v1922_v63 = vmax.f32 %v1508_v42, 0.0  ;;  %v1084_v17 = vadd.f32 %v3647_v22, %v1083_v8  ;;  %v1500_v0 = vadd.f32 %v3647_v22, %v1499_v16  ;;  %v2949_v31 = vpop.f32.mrf.mxu0  ;;  %v3053_v15 = vpop.f32.mrf.mxu1 }
 0x12b   :  { %v1799_v52 = vmax.f32 %v3877_v59, 0.0  ;;  %v3903_v32 = vmax.f32 %v4662_v58, %v1815_v40  ;;  %v4663_v33 = vmax.f32 %v3685_v38, 0.0  ;;  %v4664_v18 = vmax.f32 %v3755_v2, 0.0 }
 0x12c   :  { %v4666_v8 = vmax.f32 %v3759_v3, 0.0  ;;  %v1816_v19 = vmax.f32 %v1084_v17, 0.0  ;;  %v1920_v62 = vmax.f32 %v1500_v0, 0.0  ;;  %v3923_v38 = vadd.f32 %v3642_v21, %v3647_v22 }
 0x12d   :  { %v3907_v30 = vmax.f32 %v4663_v33, %v1919_v14  ;;  %v3911_v42 = vmax.f32 %v4664_v18, %v1818_v45  ;;  %v1105_v40 = vadd.f32 %v2949_v31, %v3647_v22  ;;  %v1521_v2 = vadd.f32 %v3053_v15, %v3647_v22  ;;  %v1096_v45 = vpop.f32.mrf.mxu0  ;;  %v1512_v14 = vpop.f32.mrf.mxu1 }
 0x12e   :  { %v3915_v16 = vmax.f32 %v4666_v8, %v1922_v63  ;;  %v4668_v3 = vmax.f32 %v3700_v47, 0.0  ;;  %v4670_v17 = vmax.f32 %v3703_v48, 0.0  ;;  %v1097_v20 = vadd.f32 %v3647_v22, %v1096_v45 }
 0x12f   :  { %4665 = vst [vmem:[#allocation10_spill] sm:$0xff] %v3911_v42  ;;  %v1513_v58 = vadd.f32 %v3647_v22, %v1512_v14  ;;  %v3939_v21 = vadd.f32 %v3647_v22, %v3649_v23  ;;  %v3943_v15 = vadd.f32 %v3647_v22, %v3651_v24  ;;  %v1821_v33 = vmax.f32 %v1105_v40, 0.0  ;;  %v3054_v31 = vpop.f32.mrf.mxu1 }
 0x130   :  { %4667 = vst [vmem:[#allocation11_spill] sm:$0xff] %v3915_v16  ;;  %v3929_v63 = vmax.f32 %v4668_v3, %v1816_v19  ;;  %v3933_v0 = vmax.f32 %v4670_v17, %v1920_v62  ;;  %v1925_v47 = vmax.f32 %v1521_v2, 0.0  ;;  %v2950_v19 = vpop.f32.mrf.mxu0  ;;  %v1819_v18 = vmax.f32 %v1097_v20, 0.0 }
 0x131   :  { %v1923_v48 = vmax.f32 %v1513_v58, 0.0  ;;  %v1108_v62 = vadd.f32 %v2950_v19, %v3647_v22  ;;  %v1524_v8 = vadd.f32 %v3054_v31, %v3647_v22  ;;  %v4672_v23 = vmax.f32 %v3791_v50, 0.0  ;;  %v1515_v17 = vpop.f32.mrf.mxu1 }
 0x132   :  { %4669 = vst [vmem:[#allocation12_spill] sm:$0xff] %v3929_v63  ;;  %4671 = vst [vmem:[#allocation13_spill] sm:$0xff] %v3933_v0  ;;  %v4674_v24 = vmax.f32 %v3795_v41, 0.0  ;;  %v1099_v2 = vpop.f32.mrf.mxu0  ;;  %v4676_v20 = vmax.f32 %v3724_v61, 0.0  ;;  %v4678_v19 = vmax.f32 %v3727_v29, 0.0  ;;  %v1800_v50 = vmax.f32 %v3939_v21, 0.0 }
 0x133   :  { %v3951_v3 = vmax.f32 %v4672_v23, %v1821_v33  ;;  %v1822_v45 = vmax.f32 %v1108_v62, 0.0  ;;  %v1926_v14 = vmax.f32 %v1524_v8, 0.0  ;;  %v1904_v33 = vmax.f32 %v3943_v15, 0.0 }
 0x134   :  { %v3955_v40 = vmax.f32 %v4674_v24, %v1925_v47  ;;  %v3959_v58 = vmax.f32 %v4676_v20, %v1819_v18  ;;  %v3963_v31 = vmax.f32 %v4678_v19, %v1923_v48  ;;  %v1100_v41 = vadd.f32 %v3647_v22, %v1099_v2  ;;  %v2953_v23 = vpop.f32.mrf.mxu0  ;;  %v3057_v24 = vpop.f32.mrf.mxu1 }
 0x135   :  { %4673 = vst [vmem:[#allocation14_spill] sm:$0xff] %v3951_v3  ;;  %v1516_v47 = vadd.f32 %v3647_v22, %v1515_v17  ;;  %v4680_v61 = vmax.f32 %v3819_v13, 0.0  ;;  %v4682_v29 = vmax.f32 %v3823_v51, 0.0  ;;  %v1121_v62 = vadd.f32 %v2953_v23, %v3647_v22 }
 0x136   :  { %4675 = vst [vmem:[#allocation15_spill] sm:$0xff] %v3955_v40  ;;  %4677 = vst [vmem:[#allocation16_spill] sm:$0xff] %v3959_v58  ;;  %v1537_v21 = vadd.f32 %v3057_v24, %v3647_v22  ;;  %v3981_v15 = vadd.f32 %v3659_v27, %v3647_v22  ;;  %v3985_v8 = vadd.f32 %v3661_v28, %v3647_v22  ;;  %v1820_v2 = vmax.f32 %v1100_v41, 0.0  ;;  %v1528_v17 = vpop.f32.mrf.mxu1 }
 0x137   :  { %4679 = vst [vmem:[#allocation17_spill] sm:$0xff] %v3963_v31  ;;  %v3971_v18 = vmax.f32 %v4680_v61, %v1822_v45  ;;  %v3975_v48 = vmax.f32 %v4682_v29, %v1926_v14  ;;  %v1924_v13 = vmax.f32 %v1516_v47, 0.0  ;;  %v1112_v45 = vpop.f32.mrf.mxu0  ;;  %v1825_v20 = vmax.f32 %v1121_v62, 0.0 }
 0x138   :  { %v1929_v51 = vmax.f32 %v1537_v21, 0.0  ;;  %v1113_v14 = vadd.f32 %v3647_v22, %v1112_v45  ;;  %v1529_v19 = vadd.f32 %v3647_v22, %v1528_v17  ;;  %v1033_v23 = vadd.f32 %v3647_v22, %v3677_v35  ;;  %v3058_v29 = vpop.f32.mrf.mxu1 }
 0x139   :  { %4681 = vst [vmem:[#allocation18_spill] sm:$0xff] %v3971_v18  ;;  %4683 = vst [vmem:[#allocation19_spill] sm:$0xff] %v3975_v48  ;;  %v1449_v27 = vadd.f32 %v3647_v22, %v3679_v36  ;;  %v4684_v24 = vmax.f32 %v3743_v1, 0.0  ;;  %v4686_v41 = vmax.f32 %v3747_v34, 0.0  ;;  %v2954_v61 = vpop.f32.mrf.mxu0  ;;  %v4003_v62 = vmax.f32 %v1799_v52, %v1825_v20 }
 0x13a   :  { %v4689_v21 = vmax.f32 %v3881_v60, 0.0  ;;  %v1823_v45 = vmax.f32 %v1113_v14, 0.0  ;;  %v1927_v36 = vmax.f32 %v1529_v19, 0.0  ;;  %v1124_v34 = vadd.f32 %v2954_v61, %v3647_v22 }
 0x13b   :  { %v3995_v28 = vmax.f32 %v4684_v24, %v1820_v2  ;;  %v3999_v47 = vmax.f32 %v4686_v41, %v1924_v13  ;;  %4688 = vst [vmem:[#allocation22_spill] sm:$0xff] %v4003_v62  ;;  %v1540_v13 = vadd.f32 %v3058_v29, %v3647_v22  ;;  %v1115_v17 = vpop.f32.mrf.mxu0  ;;  %v1531_v24 = vpop.f32.mrf.mxu1  ;;  %v4691_v59 = vmax.f32 %v3767_v6, 0.0 }
 0x13c   :  { %v4007_v35 = vmax.f32 %v4689_v21, %v1929_v51  ;;  %v4693_v60 = vmax.f32 %v3771_v7, 0.0  ;;  %v1116_v51 = vadd.f32 %v3647_v22, %v1115_v17  ;;  %v1532_v14 = vadd.f32 %v3647_v22, %v1531_v24 }
 0x13d   :  { %4685 = vst [vmem:[#allocation20_spill] sm:$0xff] %v3995_v28  ;;  %4687 = vst [vmem:[#allocation21_spill] sm:$0xff] %v3999_v47  ;;  %v4015_v52 = vmax.f32 %v4691_v59, %v1823_v45  ;;  %v1803_v19 = vmax.f32 %v1033_v23, 0.0  ;;  %v1907_v41 = vmax.f32 %v1449_v27, 0.0  ;;  %v1826_v21 = vmax.f32 %v1124_v34, 0.0  ;;  %v2957_v2 = vpop.f32.mrf.mxu0  ;;  %v3061_v29 = vpop.f32.mrf.mxu1 }
 0x13e   :  { %4690 = vst [vmem:[#allocation23_spill] sm:$0xff] %v4007_v35  ;;  %v4019_v20 = vmax.f32 %v4693_v60, %v1927_v36  ;;  %v1930_v61 = vmax.f32 %v1540_v13, 0.0  ;;  %v1824_v1 = vmax.f32 %v1116_v51, 0.0  ;;  %v1928_v35 = vmax.f32 %v1532_v14, 0.0 }
 0x13f   :  { %4692 = vst [vmem:[#allocation24_spill] sm:$0xff] %v4015_v52  ;;  %v1137_v6 = vadd.f32 %v2957_v2, %v3647_v22  ;;  %v1553_v45 = vadd.f32 %v3061_v29, %v3647_v22  ;;  %v1036_v7 = vadd.f32 %v3647_v22, %v3709_v53  ;;  %v1452_v36 = vadd.f32 %v3647_v22, %v3711_v54  ;;  %v1128_v27 = vpop.f32.mrf.mxu0  ;;  %v1544_v34 = vpop.f32.mrf.mxu1 }
 0x140   :  { %4694 = vst [vmem:[#allocation25_spill] sm:$0xff] %v4019_v20  ;;  %v4029_v17 = vmax.f32 %v1800_v50, %v1826_v21  ;;  %v4031_v23 = vmax.f32 %v1904_v33, %v1930_v61  ;;  %v4697_v13 = vmax.f32 %v3803_v10, 0.0  ;;  %v4699_v2 = vmax.f32 %v3807_v11, 0.0 }
 0x141   :  { %v1829_v60 = vmax.f32 %v1137_v6, 0.0  ;;  %v1933_v51 = vmax.f32 %v1553_v45, 0.0  ;;  %v4043_v53 = vadd.f32 %v3695_v43, %v3647_v22  ;;  %v4047_v54 = vadd.f32 %v3697_v44, %v3647_v22  ;;  %v2958_v33 = vpop.f32.mrf.mxu0 }
 0x142   :  { %4695 = vst [vmem:[#allocation26_spill] sm:$0xff] %v4029_v17  ;;  %4696 = vst [vmem:[#allocation27_spill] sm:$0xff] %v4031_v23  ;;  %v4035_v24 = vmax.f32 %v4697_v13, %v1824_v1  ;;  %v4039_v59 = vmax.f32 %v4699_v2, %v1928_v35  ;;  %v1129_v50 = vadd.f32 %v3647_v22, %v1128_v27  ;;  %v3062_v1 = vpop.f32.mrf.mxu1  ;;  %v1804_v43 = vmax.f32 %v1036_v7, 0.0 }
 0x143   :  { %v1545_v10 = vadd.f32 %v3647_v22, %v1544_v34  ;;  %v4051_v14 = vmax.f32 %v1803_v19, %v1829_v60  ;;  %v4053_v11 = vmax.f32 %v1907_v41, %v1933_v51  ;;  %v1140_v35 = vadd.f32 %v2958_v33, %v3647_v22  ;;  %v1131_v44 = vpop.f32.mrf.mxu0  ;;  %v4703_v41 = vld [vmem:[#allocation2_spill] sm:$0xff] }
 0x144   :  { %4698 = vst [vmem:[#allocation28_spill] sm:$0xff] %v4035_v24  ;;  %4700 = vst [vmem:[#allocation29_spill] sm:$0xff] %v4039_v59  ;;  %v1556_v21 = vadd.f32 %v3062_v1, %v3647_v22  ;;  %v1908_v61 = vmax.f32 %v1452_v36, 0.0  ;;  %v1827_v29 = vmax.f32 %v1129_v50, 0.0  ;;  %v1547_v45 = vpop.f32.mrf.mxu1  ;;  %v1132_v34 = vadd.f32 %v3647_v22, %v1131_v44 }
 0x145   :  { %4701 = vst [vmem:[#allocation30_spill] sm:$0xff] %v4051_v14  ;;  %4702 = vst [vmem:[#allocation31_spill] sm:$0xff] %v4053_v11  ;;  %v1931_v6 = vmax.f32 %v1545_v10, 0.0  ;;  %v1830_v13 = vmax.f32 %v1140_v35, 0.0  ;;  %v1548_v2 = vadd.f32 %v3647_v22, %v1547_v45  ;;  %v1049_v19 = vadd.f32 %v3647_v22, %v3749_v56  ;;  %v2961_v10 = vpop.f32.mrf.mxu0  ;;  %v4710_v56 = vld [vmem:[#allocation5_spill] sm:$0xff] }
 0x146   :  { %v1934_v27 = vmax.f32 %v1556_v21, 0.0  ;;  %v1465_v60 = vadd.f32 %v3647_v22, %v4703_v41  ;;  %v4704_v51 = vmax.f32 %v3853_v12, 0.0  ;;  %v4706_v36 = vmax.f32 %v3857_v57, 0.0  ;;  %v3065_v33 = vpop.f32.mrf.mxu1  ;;  %v4711_v41 = vld [vmem:[#allocation6_spill] sm:$0xff] }
 0x147   :  { %v4071_v1 = vmax.f32 %v1804_v43, %v1830_v13  ;;  %v1828_v21 = vmax.f32 %v1132_v34, 0.0  ;;  %v1932_v44 = vmax.f32 %v1548_v2, 0.0  ;;  %v1052_v45 = vadd.f32 %v3647_v22, %v4710_v56 }
 0x148   :  { %v4065_v7 = vmax.f32 %v4704_v51, %v1827_v29  ;;  %v4069_v50 = vmax.f32 %v4706_v36, %v1931_v6  ;;  %v4073_v35 = vmax.f32 %v1908_v61, %v1934_v27  ;;  %v1468_v12 = vadd.f32 %v3647_v22, %v4711_v41  ;;  %v1144_v6 = vpop.f32.mrf.mxu0  ;;  %v1560_v51 = vpop.f32.mrf.mxu1 }
 0x149   :  { %4708 = vst [vmem:[#allocation33_spill] sm:$0xff] %v4071_v1  ;;  %v1153_v29 = vadd.f32 %v2961_v10, %v3647_v22  ;;  %v1569_v57 = vadd.f32 %v3065_v33, %v3647_v22  ;;  %v4712_v36 = vmax.f32 %v3919_v37, 0.0  ;;  %v4714_v61 = vmax.f32 %v3923_v38, 0.0 }
 0x14a   :  { %4705 = vst [vmem:[#allocation2_spill] sm:$0xff] %v4065_v7  ;;  %4707 = vst [vmem:[#allocation32_spill] sm:$0xff] %v4069_v50  ;;  %v1145_v27 = vadd.f32 %v3647_v22, %v1144_v6  ;;  %v1561_v34 = vadd.f32 %v3647_v22, %v1560_v51  ;;  %v1807_v2 = vmax.f32 %v1049_v19, 0.0  ;;  %v1911_v56 = vmax.f32 %v1465_v60, 0.0  ;;  %v3066_v33 = vpop.f32.mrf.mxu1 }
 0x14b   :  { %4709 = vst [vmem:[#allocation34_spill] sm:$0xff] %v4073_v35  ;;  %v4083_v43 = vmax.f32 %v4712_v36, %v1828_v21  ;;  %v4087_v13 = vmax.f32 %v4714_v61, %v1932_v44  ;;  %v1833_v41 = vmax.f32 %v1153_v29, 0.0  ;;  %v1937_v10 = vmax.f32 %v1569_v57, 0.0  ;;  %v2962_v35 = vpop.f32.mrf.mxu0 }
 0x14c   :  { %v1831_v1 = vmax.f32 %v1145_v27, 0.0  ;;  %v1935_v11 = vmax.f32 %v1561_v34, 0.0  ;;  %v1156_v37 = vadd.f32 %v2962_v35, %v3647_v22  ;;  %v1572_v21 = vadd.f32 %v3066_v33, %v3647_v22  ;;  %v1563_v51 = vpop.f32.mrf.mxu1 }
 0x14d   :  { %4713 = vst [vmem:[#allocation5_spill] sm:$0xff] %v4083_v43  ;;  %4715 = vst [vmem:[#allocation6_spill] sm:$0xff] %v4087_v13  ;;  %v1808_v36 = vmax.f32 %v1052_v45, 0.0  ;;  %v1912_v38 = vmax.f32 %v1468_v12, 0.0  ;;  %v4093_v44 = vmax.f32 %v1807_v2, %v1833_v41  ;;  %v4095_v61 = vmax.f32 %v1911_v56, %v1937_v10  ;;  %v1147_v6 = vpop.f32.mrf.mxu0 }
 0x14e   :  { %v4718_v19 = vmax.f32 %v3981_v15, 0.0  ;;  %v4720_v29 = vmax.f32 %v3985_v8, 0.0  ;;  %v1834_v27 = vmax.f32 %v1156_v37, 0.0  ;;  %v1938_v35 = vmax.f32 %v1572_v21, 0.0  ;;  %v3069_v2 = vpop.f32.mrf.mxu1 }
 0x14f   :  { %4716 = vst [vmem:[#allocation35_spill] sm:$0xff] %v4093_v44  ;;  %4717 = vst [vmem:[#allocation36_spill] sm:$0xff] %v4095_v61  ;;  %v1148_v34 = vadd.f32 %v3647_v22, %v1147_v6  ;;  %v1564_v45 = vadd.f32 %v3647_v22, %v1563_v51  ;;  %v2965_v12 = vpop.f32.mrf.mxu0  ;;  %v1806_v15 = vmax.f32 %v4043_v53, 0.0  ;;  %v4121_v43 = vadd.f32 %v3069_v2, %v3647_v22 }
 0x150   :  { %v4099_v60 = vmax.f32 %v4718_v19, %v1831_v1  ;;  %v4103_v57 = vmax.f32 %v4720_v29, %v1935_v11  ;;  %v4107_v56 = vmax.f32 %v1808_v36, %v1834_v27  ;;  %v4109_v41 = vmax.f32 %v1912_v38, %v1938_v35  ;;  %v1576_v33 = vpop.f32.mrf.mxu1 }
 0x151   :  { %v1910_v1 = vmax.f32 %v4047_v54, 0.0  ;;  %v1832_v10 = vmax.f32 %v1148_v34, 0.0  ;;  %v1936_v8 = vmax.f32 %v1564_v45, 0.0  ;;  %v1160_v11 = vpop.f32.mrf.mxu0  ;;  %v4118_v13 = vadd.f32 %v2965_v12, %v3647_v22 }
 0x152   :  { %4719 = vst [vmem:[#allocation37_spill] sm:$0xff] %v4099_v60  ;;  %4721 = vst [vmem:[#allocation38_spill] sm:$0xff] %v4103_v57  ;;  %v3070_v51 = vpop.f32.mrf.mxu1  ;;  %v4124_v7 = vadd.f32 %v3647_v22, %v1160_v11  ;;  %v4127_v59 = vadd.f32 %v3647_v22, %v1576_v33 }
 0x153   :  { %4722 = vst [vmem:[#allocation39_spill] sm:$0xff] %v4107_v56  ;;  %4723 = vst [vmem:[#allocation40_spill] sm:$0xff] %v4109_v41  ;;  %v4113_v37 = vmax.f32 %v1806_v15, %v1832_v10  ;;  %v4115_v21 = vmax.f32 %v1910_v1, %v1936_v8  ;;  %v2966_v6 = vpop.f32.mrf.mxu0  ;;  %v4135_v2 = vadd.f32 %v3070_v51, %v3647_v22 }
 0x154   :  { %v1579_v29 = vpop.f32.mrf.mxu1  ;;  %v4132_v12 = vadd.f32 %v2966_v6, %v3647_v22 }
 0x155   :  { %4724 = vst [vmem:[#allocation41_spill] sm:$0xff] %v4113_v37  ;;  %4725 = vst [vmem:[#allocation42_spill] sm:$0xff] %v4115_v21  ;;  %v1163_v19 = vpop.f32.mrf.mxu0  ;;  %v4141_v33 = vadd.f32 %v3647_v22, %v1579_v29 }
 0x156   :  { %v3073_v27 = vpop.f32.mrf.mxu1  ;;  %v4138_v11 = vadd.f32 %v3647_v22, %v1163_v19 }
 0x157   :  { %v2969_v36 = vpop.f32.mrf.mxu0  ;;  %v4147_v17 = vadd.f32 %v3073_v27, %v3647_v22 }
 0x158   :  { %v1592_v35 = vpop.f32.mrf.mxu1  ;;  %v4144_v47 = vadd.f32 %v2969_v36, %v3647_v22 }
 0x159   :  { %v1176_v38 = vpop.f32.mrf.mxu0  ;;  %v4155_v28 = vadd.f32 %v3647_v22, %v1592_v35 }
 0x15a   :  { %v3074_v53 = vpop.f32.mrf.mxu1  ;;  %v4152_v51 = vadd.f32 %v3647_v22, %v1176_v38 }
 0x15b   :  { %v2970_v41 = vpop.f32.mrf.mxu0  ;;  %v4161_v36 = vadd.f32 %v3074_v53, %v3647_v22 }
 0x15c   :  { %v1595_v54 = vpop.f32.mrf.mxu1  ;;  %v4158_v29 = vadd.f32 %v2970_v41, %v3647_v22 }
 0x15d   :  { %v1179_v56 = vpop.f32.mrf.mxu0  ;;  %v4167_v6 = vadd.f32 %v3647_v22, %v1595_v54 }
 0x15e   :  { %v3077_v45 = vpop.f32.mrf.mxu1  ;;  %v4164_v27 = vadd.f32 %v3647_v22, %v1179_v56 }
 0x15f   :  { %v2973_v34 = vpop.f32.mrf.mxu0  ;;  %v4175_v18 = vadd.f32 %v3077_v45, %v3647_v22 }
 0x160   :  { %v1608_v44 = vpop.f32.mrf.mxu1  ;;  %v4172_v35 = vadd.f32 %v2973_v34, %v3647_v22 }
 0x161   :  { %v1192_v61 = vpop.f32.mrf.mxu0  ;;  %4727 = vst [vmem:[#allocation44_spill] sm:$0xff] %v4175_v18  ;;  %v4187_v45 = vadd.f32 %v3647_v22, %v1608_v44 }
 0x162   :  { %v3078_v10 = vpop.f32.mrf.mxu1  ;;  %4726 = vst [vmem:[#allocation43_spill] sm:$0xff] %v4172_v35  ;;  %v4184_v34 = vadd.f32 %v3647_v22, %v1192_v61 }
 0x163   :  { %v2974_v15 = vpop.f32.mrf.mxu0  ;;  %v4199_v44 = vadd.f32 %v3078_v10, %v3647_v22 }
 0x164   :  { %v1611_v8 = vpop.f32.mrf.mxu1  ;;  %v4196_v61 = vadd.f32 %v2974_v15, %v3647_v22 }
 0x165   :  { %v1195_v1 = vpop.f32.mrf.mxu0  ;;  %4729 = vst [vmem:[#allocation46_spill] sm:$0xff] %v4199_v44  ;;  %v4205_v56 = vadd.f32 %v3647_v22, %v1611_v8 }
 0x166   :  { %v3081_v37 = vpop.f32.mrf.mxu1  ;;  %4728 = vst [vmem:[#allocation45_spill] sm:$0xff] %v4196_v61  ;;  %v4202_v53 = vadd.f32 %v3647_v22, %v1195_v1 }
 0x167   :  { %v2977_v21 = vpop.f32.mrf.mxu0  ;;  %v4211_v38 = vadd.f32 %v3081_v37, %v3647_v22 }
 0x168   :  { %v1624_v60 = vpop.f32.mrf.mxu1  ;;  %v4208_v54 = vadd.f32 %v2977_v21, %v3647_v22 }
 0x169   :  { %v1208_v57 = vpop.f32.mrf.mxu0  ;;  %4731 = vst [vmem:[#allocation48_spill] sm:$0xff] %v4211_v38  ;;  %v4219_v3 = vadd.f32 %v3647_v22, %v1624_v60 }
 0x16a   :  { %v3082_v50 = vpop.f32.mrf.mxu1  ;;  %4730 = vst [vmem:[#allocation47_spill] sm:$0xff] %v4208_v54  ;;  %v4216_v10 = vadd.f32 %v3647_v22, %v1208_v57 }
 0x16b   :  { %v2978_v14 = vpop.f32.mrf.mxu0  ;;  %v4225_v21 = vadd.f32 %v3082_v50, %v3647_v22 }
 0x16c   :  { %v1627_v23 = vpop.f32.mrf.mxu1  ;;  %v4222_v8 = vadd.f32 %v2978_v14, %v3647_v22 }
 0x16d   :  { %v1211_v24 = vpop.f32.mrf.mxu0  ;;  %4733 = vst [vmem:[#allocation50_spill] sm:$0xff] %v4225_v21  ;;  %v4231_v15 = vadd.f32 %v3647_v22, %v1627_v23 }
 0x16e   :  { %v3085_v52 = vpop.f32.mrf.mxu1  ;;  %4732 = vst [vmem:[#allocation49_spill] sm:$0xff] %v4222_v8  ;;  %v4228_v37 = vadd.f32 %v3647_v22, %v1211_v24 }
 0x16f   :  { %v2981_v20 = vpop.f32.mrf.mxu0  ;;  %v4239_v35 = vadd.f32 %v3085_v52, %v3647_v22 }
 0x170   :  { %v1640_v48 = vpop.f32.mrf.mxu1  ;;  %v4236_v60 = vadd.f32 %v2981_v20, %v3647_v22 }
 0x171   :  { %v1224_v19 = vpop.f32.mrf.mxu0  ;;  %4735 = vst [vmem:[#allocation52_spill] sm:$0xff] %v4239_v35  ;;  %v4251_v52 = vadd.f32 %v3647_v22, %v1640_v48 }
 0x172   :  { %v3086_v40 = vpop.f32.mrf.mxu1  ;;  %4734 = vst [vmem:[#allocation51_spill] sm:$0xff] %v4236_v60  ;;  %v4248_v20 = vadd.f32 %v3647_v22, %v1224_v19 }
 0x173   :  { %v2982_v41 = vpop.f32.mrf.mxu0  ;;  %4736 = vst [vmem:[#allocation53_spill] sm:$0xff] %v4251_v52  ;;  %v4263_v48 = vadd.f32 %v3086_v40, %v3647_v22 }
 0x174   :  { %v1643_v58 = vpop.f32.mrf.mxu1  ;;  %v4260_v19 = vadd.f32 %v2982_v41, %v3647_v22 }
 0x175   :  { %v1227_v31 = vpop.f32.mrf.mxu0  ;;  %4738 = vst [vmem:[#allocation55_spill] sm:$0xff] %v4263_v48  ;;  %v4269_v24 = vadd.f32 %v3647_v22, %v1643_v58 }
 0x176   :  { %v3089_v63 = vpop.f32.mrf.mxu1  ;;  %4737 = vst [vmem:[#allocation54_spill] sm:$0xff] %v4260_v19  ;;  %v4266_v50 = vadd.f32 %v3647_v22, %v1227_v31 }
 0x177   :  { %v2985_v0 = vpop.f32.mrf.mxu0  ;;  %4740 = vst [vmem:[#allocation57_spill] sm:$0xff] %v4269_v24  ;;  %v4279_v40 = vadd.f32 %v3089_v63, %v3647_v22 }
 0x178   :  { %v1656_v18 = vpop.f32.mrf.mxu1  ;;  %4739 = vst [vmem:[#allocation56_spill] sm:$0xff] %v4266_v50  ;;  %v4276_v42 = vadd.f32 %v2985_v0, %v3647_v22  ;;  %v4747_v0 = vmax.f32 %v4127_v59, 0.0  ;;  %v4752_v50 = vld [vmem:[#allocation3_spill] sm:$0xff] }
 0x179   :  { %v1240_v1 = vpop.f32.mrf.mxu0  ;;  %4742 = vst [vmem:[#allocation59_spill] sm:$0xff] %v4279_v40  ;;  %v4285_v58 = vadd.f32 %v3647_v22, %v1656_v18 }
 0x17a   :  { %v3090_v16 = vpop.f32.mrf.mxu1  ;;  %4741 = vst [vmem:[#allocation58_spill] sm:$0xff] %v4276_v42  ;;  %v4282_v60 = vadd.f32 %v3647_v22, %v1240_v1 }
 0x17b   :  { %v2986_v14 = vpop.f32.mrf.mxu0 }
 0x17c   :  { %v1659_v61 = vpop.f32.mrf.mxu1 }
 0x17d   :  { %v1243_v44 = vpop.f32.mrf.mxu0 }
 0x17e   :  { %v3093_v54 = vpop.f32.mrf.mxu1  ;;  %v4298_v18 = vadd.f32 %v3647_v22, %v1243_v44 }
 0x17f   :  { %v2989_v38 = vpop.f32.mrf.mxu0  ;;  %v1681_v57 = vadd.f32 %v3093_v54, %v3647_v22  ;;  %v4291_v54 = vadd.f32 %v3090_v16, %v3647_v22  ;;  %v4746_v16 = vmax.f32 %v4124_v7, 0.0 }
 0x180   :  { %v1265_v23 = vadd.f32 %v2989_v38, %v3647_v22  ;;  %v1672_v31 = vpop.f32.mrf.mxu1  ;;  %v4288_v38 = vadd.f32 %v2986_v14, %v3647_v22  ;;  %v4301_v14 = vadd.f32 %v3647_v22, %v1659_v61 }
 0x181   :  { %v1256_v35 = vpop.f32.mrf.mxu0  ;;  %4744 = vst [vmem:[#allocation61_spill] sm:$0xff] %v4291_v54  ;;  %v1965_v62 = vmax.f32 %v1681_v57, 0.0  ;;  %v4327_v7 = vadd.f32 %v3647_v22, %v1672_v31  ;;  %v4753_v54 = vld [vmem:[#allocation4_spill] sm:$0xff]  ;;  %v4754_v31 = vld [vmem:[#allocation7_spill] sm:$0xff] }
 0x182   :  { %4743 = vst [vmem:[#allocation60_spill] sm:$0xff] %v4288_v38  ;;  %v1861_v63 = vmax.f32 %v1265_v23, 0.0  ;;  %v3094_v8 = vpop.f32.mrf.mxu1  ;;  %4745 = vst [vmem:[#allocation62_spill] sm:$0xff] %v4301_v14  ;;  %v4324_v61 = vadd.f32 %v3647_v22, %v1256_v35 }
 0x183   :  { %v2990_v21 = vpop.f32.mrf.mxu0  ;;  %v1684_v57 = vadd.f32 %v3094_v8, %v3647_v22  ;;  %4749 = vst [vmem:[#allocation64_spill] sm:$0xff] %v4327_v7 }
 0x184   :  { %v1268_v41 = vadd.f32 %v2990_v21, %v3647_v22  ;;  %v4309_v48 = vpop.f32.mrf.mxu1  ;;  %v2043_v42 = vmax.f32 %v4746_v16, %v1861_v63  ;;  %v2069_v21 = vmax.f32 %v4747_v0, %v1965_v62  ;;  %4748 = vst [vmem:[#allocation63_spill] sm:$0xff] %v4324_v61  ;;  %v4750_v62 = vmax.f32 %v4138_v11, 0.0  ;;  %v4755_v61 = vld [vmem:[#allocation8_spill] sm:$0xff] }
 0x185   :  { %v4307_v23 = vpop.f32.mrf.mxu0  ;;  %v1966_v8 = vmax.f32 %v1684_v57, 0.0 }
 0x186   :  { %v1862_v40 = vmax.f32 %v1268_v41, 0.0  ;;  %v3097_v24 = vpop.f32.mrf.mxu1  ;;  %v4751_v41 = vmax.f32 %v4141_v33, 0.0  ;;  %v2095_v35 = vmax.f32 %v4752_v50, %v2043_v42  ;;  %v2121_v38 = vmax.f32 %v4753_v54, %v2069_v21  ;;  %v4346_v42 = vld [vmem:[%s4622_s2] ss:$0 sm:$0xff] }
 0x187   :  { %v2993_v19 = vpop.f32.mrf.mxu0  ;;  %v1697_v1 = vadd.f32 %v3097_v24, %v3647_v22  ;;  %v4756_v33 = vmax.f32 %v4152_v51, 0.0 }
 0x188   :  { %v1281_v44 = vadd.f32 %v2993_v19, %v3647_v22  ;;  %v2044_v59 = vmax.f32 %v4750_v62, %v1862_v40  ;;  %v2070_v0 = vmax.f32 %v4751_v41, %v1966_v8  ;;  %v1688_v16 = vpop.f32.mrf.mxu1 }
 0x189   :  { %v1272_v63 = vpop.f32.mrf.mxu0  ;;  %v1969_v52 = vmax.f32 %v1697_v1, 0.0  ;;  %v1689_v24 = vadd.f32 %v3647_v22, %v1688_v16 }
 0x18a   :  { %v1865_v57 = vmax.f32 %v1281_v44, 0.0  ;;  %v1273_v19 = vadd.f32 %v3647_v22, %v1272_v63  ;;  %v2096_v7 = vmax.f32 %v4754_v31, %v2044_v59  ;;  %v2122_v11 = vmax.f32 %v4755_v61, %v2070_v0  ;;  %v3098_v62 = vpop.f32.mrf.mxu1  ;;  %v4758_v59 = vld [vmem:[#allocation9_spill] sm:$0xff] }
 0x18b   :  { %v2994_v40 = vpop.f32.mrf.mxu0  ;;  %v4757_v44 = vmax.f32 %v4155_v28, 0.0  ;;  %v1967_v63 = vmax.f32 %v1689_v24, 0.0  ;;  %v1700_v54 = vadd.f32 %v4346_v42, %v3098_v62  ;;  %v4762_v62 = vmax.f32 %v4167_v6, 0.0 }
 0x18c   :  { %v2047_v8 = vmax.f32 %v4756_v33, %v1865_v57  ;;  %v1863_v41 = vmax.f32 %v1273_v19, 0.0  ;;  %v2631_v14 = vpack.c.bf16 %v2096_v7, %v2095_v35  ;;  %v2696_v22 = vpack.c.bf16 %v2122_v11, %v2121_v38  ;;  %v1691_v21 = vpop.f32.mrf.mxu1 }
 0x18d   :  { %v2073_v1 = vmax.f32 %v4757_v44, %v1969_v52  ;;  %v1284_v50 = vadd.f32 %v4346_v42, %v2994_v40  ;;  %v1275_v61 = vpop.f32.mrf.mxu0  ;;  %v4759_v52 = vmax.f32 %v4118_v13, 0.0  ;;  %v4760_v38 = vmax.f32 %v4121_v43, 0.0 }
 0x18e   :  { %v2099_v51 = vmax.f32 %v3827_v46, %v2047_v8  ;;  %2632 = vst [vmem:[%s4623_s3] sm:$0xff] %v2631_v14   ;;  %2770 = vst [vmem:[%s4623_s3 + $0x68] sm:$0xff] %v2696_v22   ;;  %v1970_v57 = vmax.f32 %v1700_v54, 0.0  ;;  %v1276_v46 = vadd.f32 %v4346_v42, %v1275_v61  ;;  %v1692_v19 = vadd.f32 %v4346_v42, %v1691_v21  ;;  %v3101_v13 = vpop.f32.mrf.mxu1 }
 0x18f   :  { %v2125_v28 = vmax.f32 %v4758_v59, %v2073_v1  ;;  %v2045_v0 = vmax.f32 %v4759_v52, %v1863_v41  ;;  %v2071_v7 = vmax.f32 %v4760_v38, %v1967_v63  ;;  %v1866_v16 = vmax.f32 %v1284_v50, 0.0  ;;  %v2997_v24 = vpop.f32.mrf.mxu0 }
 0x190   :  { %v1297_v31 = vadd.f32 %v4346_v42, %v2997_v24  ;;  %v1713_v14 = vadd.f32 %v4346_v42, %v3101_v13  ;;  %v4761_v11 = vmax.f32 %v4164_v27, 0.0  ;;  %v2074_v33 = vmax.f32 %v4762_v62, %v1970_v57  ;;  %v1704_v41 = vpop.f32.mrf.mxu1 }
 0x191   :  { %v2097_v35 = vmax.f32 %v3839_v55, %v2045_v0  ;;  %v2123_v43 = vmax.f32 %v3843_v9, %v2071_v7  ;;  %v1864_v8 = vmax.f32 %v1276_v46, 0.0  ;;  %v1968_v44 = vmax.f32 %v1692_v19, 0.0  ;;  %v1288_v1 = vpop.f32.mrf.mxu0 }
 0x192   :  { %v2048_v40 = vmax.f32 %v4761_v11, %v1866_v16  ;;  %v1869_v63 = vmax.f32 %v1297_v31, 0.0  ;;  %v1973_v22 = vmax.f32 %v1713_v14, 0.0  ;;  %v1289_v55 = vadd.f32 %v4346_v42, %v1288_v1  ;;  %v3102_v52 = vpop.f32.mrf.mxu1 }
 0x193   :  { %v1705_v9 = vadd.f32 %v4346_v42, %v1704_v41  ;;  %v2126_v54 = vmax.f32 %v3865_v39, %v2074_v33  ;;  %v4763_v27 = vmax.f32 %v4132_v12, 0.0  ;;  %v4764_v6 = vmax.f32 %v4135_v2, 0.0  ;;  %v2998_v59 = vpop.f32.mrf.mxu0 }
 0x194   :  { %v2100_v50 = vmax.f32 %v3861_v4, %v2048_v40  ;;  %v4765_v0 = vmax.f32 %v4184_v34, 0.0  ;;  %v4766_v7 = vmax.f32 %v4187_v45, 0.0  ;;  %v1867_v57 = vmax.f32 %v1289_v55, 0.0  ;;  %v1707_v13 = vpop.f32.mrf.mxu1 }
 0x195   :  { %v2046_v61 = vmax.f32 %v4763_v27, %v1864_v8  ;;  %v2072_v21 = vmax.f32 %v4764_v6, %v1968_v44  ;;  %v1971_v46 = vmax.f32 %v1705_v9, 0.0  ;;  %v2706_v4 = vpack.c.bf16 %v2126_v54, %v2125_v28  ;;  %v1291_v24 = vpop.f32.mrf.mxu0 }
 0x196   :  { %v2051_v38 = vmax.f32 %v4765_v0, %v1869_v63  ;;  %v2077_v16 = vmax.f32 %v4766_v7, %v1973_v22  ;;  %v2641_v19 = vpack.c.bf16 %v2100_v50, %v2099_v51  ;;  %v4388_v2 = vadd.f32 %v4346_v42, %v4307_v23  ;;  %v3105_v28 = vpop.f32.mrf.mxu1 }
 0x197   :  { %v2098_v39 = vmax.f32 %v3869_v5, %v2046_v61  ;;  %v2124_v12 = vmax.f32 %v3873_v49, %v2072_v21  ;;  %v4392_v34 = vadd.f32 %v4346_v42, %v4309_v48  ;;  %2772 = vst [vmem:[%s4623_s3 + $0x78] sm:$0xff] %v2706_v4   ;;  %v1300_v23 = vadd.f32 %v4346_v42, %v2998_v59  ;;  %v3001_v48 = vpop.f32.mrf.mxu0 }
 0x198   :  { %v2103_v45 = vmax.f32 %v3887_v25, %v2051_v38  ;;  %v2129_v31 = vmax.f32 %v3891_v26, %v2077_v16  ;;  %2759 = vst [vmem:[%s4623_s3 + $0x10] sm:$0xff] %v2641_v19   ;;  %v1716_v51 = vadd.f32 %v4346_v42, %v3102_v52  ;;  %v4767_v25 = vmax.f32 %v4144_v47, 0.0  ;;  %v1720_v8 = vpop.f32.mrf.mxu1 }
 0x199   :  { %v2636_v5 = vpack.c.bf16 %v2098_v39, %v2097_v35  ;;  %v2701_v49 = vpack.c.bf16 %v2124_v12, %v2123_v43  ;;  %v4768_v26 = vmax.f32 %v4147_v17, 0.0  ;;  %v1292_v40 = vadd.f32 %v4346_v42, %v1291_v24  ;;  %v1304_v17 = vpop.f32.mrf.mxu0  ;;  %v4775_v12 = vld [vmem:[#allocation12_spill] sm:$0xff] }
 0x19a   :  { %v2049_v14 = vmax.f32 %v4767_v25, %v1867_v57  ;;  %v1708_v62 = vadd.f32 %v4346_v42, %v1707_v13  ;;  %v1870_v35 = vmax.f32 %v1300_v23, 0.0  ;;  %v1974_v43 = vmax.f32 %v1716_v51, 0.0  ;;  %v3106_v6 = vpop.f32.mrf.mxu1  ;;  %v4773_v57 = vld [vmem:[#allocation10_spill] sm:$0xff]  ;;  %v4776_v13 = vld [vmem:[#allocation13_spill] sm:$0xff]  ;;  %v4779_v23 = vld [vmem:[#allocation44_spill] sm:$0xff] }
 0x19b   :  { %v2075_v11 = vmax.f32 %v4768_v26, %v1971_v46  ;;  %2758 = vst [vmem:[%s4623_s3 + $0x8] sm:$0xff] %v2636_v5   ;;  %2771 = vst [vmem:[%s4623_s3 + $0x70] sm:$0xff] %v2701_v49   ;;  %v1313_v47 = vadd.f32 %v4346_v42, %v3001_v48  ;;  %v1729_v33 = vadd.f32 %v4346_v42, %v3105_v28  ;;  %v1868_v44 = vmax.f32 %v1292_v40, 0.0  ;;  %v3002_v61 = vpop.f32.mrf.mxu0  ;;  %v4777_v5 = vld [vmem:[#allocation43_spill] sm:$0xff] }
 0x19c   :  { %v1972_v1 = vmax.f32 %v1708_v62, 0.0  ;;  %v1305_v41 = vadd.f32 %v4346_v42, %v1304_v17  ;;  %v1721_v63 = vadd.f32 %v4346_v42, %v1720_v8  ;;  %v4769_v22 = vmax.f32 %v4202_v53, 0.0  ;;  %v1723_v39 = vpop.f32.mrf.mxu1 }
 0x19d   :  { %v4770_v9 = vmax.f32 %v4205_v56, 0.0  ;;  %v1873_v54 = vmax.f32 %v1313_v47, 0.0  ;;  %v1977_v27 = vmax.f32 %v1729_v33, 0.0  ;;  %v4771_v21 = vmax.f32 %v4158_v29, 0.0  ;;  %v4774_v56 = vld [vmem:[#allocation11_spill] sm:$0xff]  ;;  %v1307_v4 = vpop.f32.mrf.mxu0  ;;  %v4784_v33 = vld [vmem:[#allocation17_spill] sm:$0xff] }
 0x19e   :  { %v2052_v55 = vmax.f32 %v4769_v22, %v1870_v35  ;;  %v4772_v52 = vmax.f32 %v4161_v36, 0.0  ;;  %v1871_v38 = vmax.f32 %v1305_v41, 0.0  ;;  %v1975_v7 = vmax.f32 %v1721_v63, 0.0  ;;  %v3109_v40 = vpop.f32.mrf.mxu1 }
 0x19f   :  { %v2078_v50 = vmax.f32 %v4770_v9, %v1974_v43  ;;  %v2050_v59 = vmax.f32 %v4771_v21, %v1868_v44  ;;  %v2101_v16 = vmax.f32 %v3903_v32, %v2049_v14  ;;  %v2127_v53 = vmax.f32 %v3907_v30, %v2075_v11  ;;  %v3005_v11 = vpop.f32.mrf.mxu0  ;;  %v4783_v43 = vld [vmem:[#allocation16_spill] sm:$0xff] }
 0x1a0   :  { %v2076_v0 = vmax.f32 %v4772_v52, %v1972_v1  ;;  %v2104_v46 = vmax.f32 %v4773_v57, %v2052_v55  ;;  %v4778_v49 = vmax.f32 %v4777_v5, 0.0  ;;  %v4780_v51 = vmax.f32 %v4779_v23, 0.0  ;;  %v1736_v44 = vpop.f32.mrf.mxu1 }
 0x1a1   :  { %v2130_v19 = vmax.f32 %v4774_v56, %v2078_v50  ;;  %v2102_v24 = vmax.f32 %v4775_v12, %v2050_v59  ;;  %v4781_v30 = vmax.f32 %v4216_v10, 0.0  ;;  %v4782_v14 = vmax.f32 %v4219_v3, 0.0  ;;  %v1320_v8 = vpop.f32.mrf.mxu0  ;;  %v4789_v56 = vld [vmem:[#allocation46_spill] sm:$0xff] }
 0x1a2   :  { %v2128_v29 = vmax.f32 %v4776_v13, %v2076_v0  ;;  %v2053_v36 = vmax.f32 %v4778_v49, %v1871_v38  ;;  %v2079_v48 = vmax.f32 %v4780_v51, %v1975_v7  ;;  %v2651_v28 = vpack.c.bf16 %v2104_v46, %v2103_v45  ;;  %v4793_v49 = vld [vmem:[#allocation47_spill] sm:$0xff] }
 0x1a3   :  { %v2716_v32 = vpack.c.bf16 %v2130_v19, %v2129_v31  ;;  %v2055_v25 = vmax.f32 %v4781_v30, %v1873_v54  ;;  %v2081_v26 = vmax.f32 %v4782_v14, %v1977_v27  ;;  %v2646_v62 = vpack.c.bf16 %v2102_v24, %v2101_v16  ;;  %v3006_v27 = vpop.f32.mrf.mxu0  ;;  %v4791_v24 = vld [vmem:[#allocation14_spill] sm:$0xff]  ;;  %v4799_v14 = vld [vmem:[#allocation20_spill] sm:$0xff] }
 0x1a4   :  { %v2711_v35 = vpack.c.bf16 %v2128_v29, %v2127_v53  ;;  %v2105_v47 = vmax.f32 %v4783_v43, %v2053_v36  ;;  %v2131_v17 = vmax.f32 %v4784_v33, %v2079_v48  ;;  %2761 = vst [vmem:[%s4623_s3 + $0x20] sm:$0xff] %v2651_v28   ;;  %v1316_v10 = vadd.f32 %v4346_v42, %v3002_v61  ;;  %v3110_v61 = vpop.f32.mrf.mxu1  ;;  %v4787_v53 = vld [vmem:[#allocation45_spill] sm:$0xff]  ;;  %v4792_v29 = vld [vmem:[#allocation15_spill] sm:$0xff]  ;;  %v4797_v48 = vld [vmem:[#allocation18_spill] sm:$0xff] }
 0x1a5   :  { %2774 = vst [vmem:[%s4623_s3 + $0x88] sm:$0xff] %v2716_v32   ;;  %v1732_v3 = vadd.f32 %v4346_v42, %v3106_v6  ;;  %v1308_v45 = vadd.f32 %v4346_v42, %v1307_v4  ;;  %v1724_v31 = vadd.f32 %v4346_v42, %v1723_v39  ;;  %2760 = vst [vmem:[%s4623_s3 + $0x18] sm:$0xff] %v2646_v62   ;;  %v4785_v0 = vmax.f32 %v4228_v37, 0.0  ;;  %v1323_v39 = vpop.f32.mrf.mxu0  ;;  %v4795_v37 = vld [vmem:[#allocation48_spill] sm:$0xff]  ;;  %v4798_v32 = vld [vmem:[#allocation19_spill] sm:$0xff] }
 0x1a6   :  { %2773 = vst [vmem:[%s4623_s3 + $0x80] sm:$0xff] %v2711_v35   ;;  %v1329_v1 = vadd.f32 %v4346_v42, %v3005_v11  ;;  %v1745_v41 = vadd.f32 %v4346_v42, %v3109_v40  ;;  %v1321_v63 = vadd.f32 %v4346_v42, %v1320_v8  ;;  %v1737_v22 = vadd.f32 %v4346_v42, %v1736_v44  ;;  %v1739_v12 = vpop.f32.mrf.mxu1  ;;  %v4800_v40 = vld [vmem:[#allocation21_spill] sm:$0xff] }
 0x1a7   :  { %v1874_v55 = vmax.f32 %v1316_v10, 0.0  ;;  %v1978_v9 = vmax.f32 %v1732_v3, 0.0  ;;  %v1872_v50 = vmax.f32 %v1308_v45, 0.0  ;;  %v1976_v54 = vmax.f32 %v1724_v31, 0.0  ;;  %v3009_v35 = vpop.f32.mrf.mxu0  ;;  %v4802_v33 = vld [vmem:[#allocation53_spill] sm:$0xff]  ;;  %v4804_v45 = vld [vmem:[#allocation24_spill] sm:$0xff] }
 0x1a8   :  { %v1877_v6 = vmax.f32 %v1329_v1, 0.0  ;;  %v1981_v21 = vmax.f32 %v1745_v41, 0.0  ;;  %v1875_v59 = vmax.f32 %v1321_v63, 0.0  ;;  %v1979_v52 = vmax.f32 %v1737_v22, 0.0  ;;  %v4805_v8 = vld [vmem:[#allocation25_spill] sm:$0xff] }
 0x1a9   :  { %v2056_v38 = vmax.f32 %v4785_v0, %v1874_v55  ;;  %v4786_v7 = vmax.f32 %v4231_v15, 0.0  ;;  %v4788_v57 = vmax.f32 %v4787_v53, 0.0  ;;  %v4790_v19 = vmax.f32 %v4789_v56, 0.0  ;;  %v1336_v55 = vpop.f32.mrf.mxu0 }
 0x1aa   :  { %v2107_v13 = vmax.f32 %v4791_v24, %v2055_v25  ;;  %v2133_v5 = vmax.f32 %v4792_v29, %v2081_v26  ;;  %v4794_v36 = vmax.f32 %v4793_v49, 0.0  ;;  %v4796_v51 = vmax.f32 %v4795_v37, 0.0  ;;  %v3113_v25 = vpop.f32.mrf.mxu1  ;;  %v4808_v24 = vld [vmem:[#allocation57_spill] sm:$0xff] }
 0x1ab   :  { %v2082_v16 = vmax.f32 %v4786_v7, %v1978_v9  ;;  %v2054_v46 = vmax.f32 %v4788_v57, %v1872_v50  ;;  %v2080_v4 = vmax.f32 %v4790_v19, %v1976_v54  ;;  %v2108_v28 = vmax.f32 %v4797_v48, %v2056_v38 }
 0x1ac   :  { %v4476_v23 = vmax.f32 %v4794_v36, %v1875_v59  ;;  %v4480_v15 = vmax.f32 %v4796_v51, %v1979_v52  ;;  %v4801_v26 = vmax.f32 %v4248_v20, 0.0  ;;  %v4803_v10 = vmax.f32 %v4802_v33, 0.0  ;;  %v1752_v9 = vpop.f32.mrf.mxu1  ;;  %v4820_v33 = vld [vmem:[#allocation26_spill] sm:$0xff] }
 0x1ad   :  { %v2134_v30 = vmax.f32 %v4798_v32, %v2082_v16  ;;  %v2106_v11 = vmax.f32 %v4799_v14, %v2054_v46  ;;  %v2132_v62 = vmax.f32 %v4800_v40, %v2080_v4  ;;  %v2661_v1 = vpack.c.bf16 %v2108_v28, %v2107_v13  ;;  %v4806_v4 = vld [vmem:[#allocation56_spill] sm:$0xff]  ;;  %v4815_v28 = vld [vmem:[#allocation23_spill] sm:$0xff] }
 0x1ae   :  { %v2059_v43 = vmax.f32 %v4801_v26, %v1877_v6  ;;  %v2085_v3 = vmax.f32 %v4803_v10, %v1981_v21  ;;  %v2109_v31 = vmax.f32 %v4804_v45, %v4476_v23  ;;  %v2135_v44 = vmax.f32 %v4805_v8, %v4480_v15  ;;  %v3010_v21 = vpop.f32.mrf.mxu0  ;;  %v3114_v59 = vpop.f32.mrf.mxu1  ;;  %v4812_v23 = vld [vmem:[#allocation50_spill] sm:$0xff]  ;;  %v4818_v40 = vld [vmem:[#allocation52_spill] sm:$0xff]  ;;  %v4821_v45 = vld [vmem:[#allocation27_spill] sm:$0xff] }
 0x1af   :  { %v2726_v41 = vpack.c.bf16 %v2134_v30, %v2133_v5  ;;  %v2656_v63 = vpack.c.bf16 %v2106_v11, %v2105_v47  ;;  %v2721_v22 = vpack.c.bf16 %v2132_v62, %v2131_v17  ;;  %v1332_v50 = vadd.f32 %v4346_v42, %v3006_v27  ;;  %2763 = vst [vmem:[%s4623_s3 + $0x30] sm:$0xff] %v2661_v1   ;;  %v4810_v5 = vld [vmem:[#allocation49_spill] sm:$0xff]  ;;  %v4814_v15 = vld [vmem:[#allocation22_spill] sm:$0xff]  ;;  %v4816_v30 = vld [vmem:[#allocation51_spill] sm:$0xff] }
 0x1b0   :  { %v1748_v20 = vadd.f32 %v4346_v42, %v3110_v61  ;;  %v1324_v54 = vadd.f32 %v4346_v42, %v1323_v39  ;;  %v1740_v6 = vadd.f32 %v4346_v42, %v1739_v12  ;;  %v1345_v47 = vadd.f32 %v4346_v42, %v3009_v35  ;;  %v1339_v56 = vpop.f32.mrf.mxu0  ;;  %v1755_v19 = vpop.f32.mrf.mxu1  ;;  %v4822_v1 = vld [vmem:[#allocation28_spill] sm:$0xff] }
 0x1b1   :  { %2776 = vst [vmem:[%s4623_s3 + $0x98] sm:$0xff] %v2726_v41   ;;  %2762 = vst [vmem:[%s4623_s3 + $0x28] sm:$0xff] %v2656_v63   ;;  %v1761_v17 = vadd.f32 %v4346_v42, %v3113_v25  ;;  %v1337_v27 = vadd.f32 %v4346_v42, %v1336_v55  ;;  %v1753_v61 = vadd.f32 %v4346_v42, %v1752_v9  ;;  %v1878_v52 = vmax.f32 %v1332_v50, 0.0  ;;  %v4823_v63 = vld [vmem:[#allocation29_spill] sm:$0xff]  ;;  %v4826_v50 = vld [vmem:[#allocation2_spill] sm:$0xff] }
 0x1b2   :  { %2775 = vst [vmem:[%s4623_s3 + $0x90] sm:$0xff] %v2721_v22   ;;  %v1982_v0 = vmax.f32 %v1748_v20, 0.0  ;;  %v1876_v38 = vmax.f32 %v1324_v54, 0.0  ;;  %v1980_v7 = vmax.f32 %v1740_v6, 0.0  ;;  %v1881_v16 = vmax.f32 %v1345_v47, 0.0  ;;  %v3013_v25 = vpop.f32.mrf.mxu0  ;;  %v3117_v26 = vpop.f32.mrf.mxu1  ;;  %v4827_v54 = vld [vmem:[#allocation32_spill] sm:$0xff] }
 0x1b3   :  { %v1985_v53 = vmax.f32 %v1761_v17, 0.0  ;;  %v1879_v57 = vmax.f32 %v1337_v27, 0.0  ;;  %v1983_v46 = vmax.f32 %v1753_v61, 0.0  ;;  %v4807_v39 = vmax.f32 %v4806_v4, 0.0  ;;  %v4828_v4 = vld [vmem:[#allocation30_spill] sm:$0xff] }
 0x1b4   :  { %v4809_v13 = vmax.f32 %v4808_v24, 0.0  ;;  %v4811_v49 = vmax.f32 %v4810_v5, 0.0  ;;  %v4813_v37 = vmax.f32 %v4812_v23, 0.0  ;;  %v2111_v48 = vmax.f32 %v4814_v15, %v2059_v43  ;;  %v1352_v47 = vpop.f32.mrf.mxu0  ;;  %v1768_v17 = vpop.f32.mrf.mxu1 }
 0x1b5   :  { %v2060_v12 = vmax.f32 %v4807_v39, %v1878_v52  ;;  %v2137_v32 = vmax.f32 %v4815_v28, %v2085_v3  ;;  %v4817_v14 = vmax.f32 %v4816_v30, 0.0  ;;  %v4819_v62 = vmax.f32 %v4818_v40, 0.0  ;;  %v4835_v28 = vld [vmem:[#allocation55_spill] sm:$0xff]  ;;  %v4837_v40 = vld [vmem:[#allocation58_spill] sm:$0xff] }
 0x1b6   :  { %v2086_v29 = vmax.f32 %v4809_v13, %v1982_v0  ;;  %v2058_v36 = vmax.f32 %v4811_v49, %v1876_v38  ;;  %v2084_v51 = vmax.f32 %v4813_v37, %v1980_v7  ;;  %v4824_v43 = vmax.f32 %v4282_v60, 0.0 }
 0x1b7   :  { %v2061_v11 = vmax.f32 %v4817_v14, %v1879_v57  ;;  %v2087_v35 = vmax.f32 %v4819_v62, %v1983_v46  ;;  %v2112_v10 = vmax.f32 %v4820_v33, %v2060_v12  ;;  %v4825_v3 = vmax.f32 %v4285_v58, 0.0  ;;  %v4829_v12 = vld [vmem:[#allocation31_spill] sm:$0xff] }
 0x1b8   :  { %v2138_v8 = vmax.f32 %v4821_v45, %v2086_v29  ;;  %v2110_v41 = vmax.f32 %v4822_v1, %v2058_v36  ;;  %v2136_v22 = vmax.f32 %v4823_v63, %v2084_v51  ;;  %v2063_v55 = vmax.f32 %v4824_v43, %v1881_v16  ;;  %v4831_v36 = vld [vmem:[#allocation62_spill] sm:$0xff]  ;;  %v4843_v1 = vld [vmem:[#allocation5_spill] sm:$0xff] }
 0x1b9   :  { %v2089_v9 = vmax.f32 %v4825_v3, %v1985_v53  ;;  %v2113_v20 = vmax.f32 %v4826_v50, %v2061_v11  ;;  %v2139_v6 = vmax.f32 %v4827_v54, %v2087_v35  ;;  %v2671_v27 = vpack.c.bf16 %v2112_v10, %v2111_v48  ;;  %v4833_v51 = vld [vmem:[#allocation54_spill] sm:$0xff]  ;;  %v4841_v10 = vld [vmem:[#allocation33_spill] sm:$0xff]  ;;  %v4845_v3 = vld [vmem:[#allocation63_spill] sm:$0xff] }
 0x1ba   :  { %v2736_v61 = vpack.c.bf16 %v2138_v8, %v2137_v32  ;;  %v2666_v52 = vpack.c.bf16 %v2110_v41, %v2109_v31  ;;  %v2731_v0 = vpack.c.bf16 %v2136_v22, %v2135_v44  ;;  %v1348_v38 = vadd.f32 %v4346_v42, %v3010_v21  ;;  %v4842_v45 = vld [vmem:[#allocation34_spill] sm:$0xff]  ;;  %v4846_v50 = vld [vmem:[#allocation64_spill] sm:$0xff] }
 0x1bb   :  { %v1764_v7 = vadd.f32 %v4346_v42, %v3114_v59  ;;  %v1340_v60 = vadd.f32 %v4346_v42, %v1339_v56  ;;  %v1756_v16 = vadd.f32 %v4346_v42, %v1755_v19  ;;  %2765 = vst [vmem:[%s4623_s3 + $0x40] sm:$0xff] %v2671_v27   ;;  %v1361_v58 = vadd.f32 %v4346_v42, %v3013_v25  ;;  %v3014_v56 = vpop.f32.mrf.mxu0  ;;  %v3118_v19 = vpop.f32.mrf.mxu1  ;;  %v4839_v25 = vld [vmem:[#allocation59_spill] sm:$0xff]  ;;  %v4844_v63 = vld [vmem:[#allocation6_spill] sm:$0xff] }
 0x1bc   :  { %2778 = vst [vmem:[%s4623_s3 + $0xa8] sm:$0xff] %v2736_v61   ;;  %2764 = vst [vmem:[%s4623_s3 + $0x38] sm:$0xff] %v2666_v52   ;;  %v1777_v31 = vadd.f32 %v4346_v42, %v3117_v26  ;;  %v1353_v44 = vadd.f32 %v4346_v42, %v1352_v47  ;;  %v1769_v21 = vadd.f32 %v4346_v42, %v1768_v17  ;;  %v1882_v59 = vmax.f32 %v1348_v38, 0.0  ;;  %v4847_v47 = vld [vmem:[#allocation37_spill] sm:$0xff]  ;;  %v4848_v27 = vld [vmem:[#allocation38_spill] sm:$0xff] }
 0x1bd   :  { %2777 = vst [vmem:[%s4623_s3 + $0xa0] sm:$0xff] %v2731_v0   ;;  %v1986_v53 = vmax.f32 %v1764_v7, 0.0  ;;  %v1880_v57 = vmax.f32 %v1340_v60, 0.0  ;;  %v1984_v46 = vmax.f32 %v1756_v16, 0.0  ;;  %v2115_v39 = vmax.f32 %v4828_v4, %v2063_v55  ;;  %v1355_v43 = vpop.f32.mrf.mxu0  ;;  %v1771_v55 = vpop.f32.mrf.mxu1  ;;  %v4851_v4 = vld [vmem:[#allocation61_spill] sm:$0xff] }
 0x1be   :  { %v2141_v24 = vmax.f32 %v4829_v12, %v2089_v9  ;;  %v1883_v13 = vmax.f32 %v1353_v44, 0.0  ;;  %v1987_v29 = vmax.f32 %v1769_v21, 0.0  ;;  %v4830_v5 = vmax.f32 %v4298_v18, 0.0 }
 0x1bf   :  { %v4832_v23 = vmax.f32 %v4831_v36, 0.0  ;;  %v4834_v15 = vmax.f32 %v4833_v51, 0.0  ;;  %v4836_v32 = vmax.f32 %v4835_v28, 0.0  ;;  %v1885_v14 = vmax.f32 %v1361_v58, 0.0  ;;  %v4857_v51 = vld [vmem:[#allocation41_spill] sm:$0xff] }
 0x1c0   :  { %v2064_v49 = vmax.f32 %v4830_v5, %v1882_v59  ;;  %v1989_v11 = vmax.f32 %v1777_v31, 0.0  ;;  %v4838_v62 = vmax.f32 %v4837_v40, 0.0  ;;  %v4840_v26 = vmax.f32 %v4839_v25, 0.0 }
 0x1c1   :  { %v2090_v37 = vmax.f32 %v4832_v23, %v1986_v53  ;;  %v2062_v48 = vmax.f32 %v4834_v15, %v1880_v57  ;;  %v2088_v30 = vmax.f32 %v4836_v32, %v1984_v46  ;;  %v1859_v9 = vmax.f32 %v4845_v3, 0.0  ;;  %v4849_v46 = vld [vmem:[#allocation60_spill] sm:$0xff] }
 0x1c2   :  { %v2065_v35 = vmax.f32 %v4838_v62, %v1883_v13  ;;  %v2091_v33 = vmax.f32 %v4840_v26, %v1987_v29  ;;  %v2116_v18 = vmax.f32 %v4841_v10, %v2064_v49  ;;  %v1963_v54 = vmax.f32 %v4846_v50, 0.0  ;;  %v4854_v29 = vld [vmem:[#allocation36_spill] sm:$0xff]  ;;  %v4855_v49 = vld [vmem:[#allocation39_spill] sm:$0xff] }
 0x1c3   :  { %v2142_v8 = vmax.f32 %v4842_v45, %v2090_v37  ;;  %v2114_v41 = vmax.f32 %v4843_v1, %v2062_v48  ;;  %v2140_v22 = vmax.f32 %v4844_v63, %v2088_v30  ;;  %v1364_v60 = vadd.f32 %v4346_v42, %v3014_v56  ;;  %v4856_v23 = vld [vmem:[#allocation40_spill] sm:$0xff]  ;;  %v4858_v48 = vld [vmem:[#allocation42_spill] sm:$0xff] }
 0x1c4   :  { %v2117_v17 = vmax.f32 %v4847_v47, %v2065_v35  ;;  %v2143_v61 = vmax.f32 %v4848_v27, %v2091_v33  ;;  %v2681_v52 = vpack.c.bf16 %v2116_v18, %v2115_v39  ;;  %v1780_v16 = vadd.f32 %v4346_v42, %v3118_v19 }
 0x1c5   :  { %v2746_v0 = vpack.c.bf16 %v2142_v8, %v2141_v24  ;;  %v2676_v38 = vpack.c.bf16 %v2114_v41, %v2113_v20  ;;  %v2741_v7 = vpack.c.bf16 %v2140_v22, %v2139_v6  ;;  %v1356_v58 = vadd.f32 %v4346_v42, %v1355_v43  ;;  %v4853_v24 = vld [vmem:[#allocation35_spill] sm:$0xff] }
 0x1c6   :  { %v1772_v31 = vadd.f32 %v4346_v42, %v1771_v55  ;;  %v1860_v44 = vmax.f32 %v4388_v2, 0.0  ;;  %v1964_v21 = vmax.f32 %v4392_v34, 0.0  ;;  %2767 = vst [vmem:[%s4623_s3 + $0x50] sm:$0xff] %v2681_v52   ;;  %v2067_v42 = vmax.f32 %v1859_v9, %v1885_v14 }
 0x1c7   :  { %2780 = vst [vmem:[%s4623_s3 + $0xb8] sm:$0xff] %v2746_v0   ;;  %2766 = vst [vmem:[%s4623_s3 + $0x48] sm:$0xff] %v2676_v38   ;;  %v2093_v2 = vmax.f32 %v1963_v54, %v1989_v11  ;;  %v1886_v20 = vmax.f32 %v1364_v60, 0.0  ;;  %v1990_v34 = vmax.f32 %v1780_v16, 0.0  ;;  %v1884_v6 = vmax.f32 %v1356_v58, 0.0 }
 0x1c8   :  { %2779 = vst [vmem:[%s4623_s3 + $0xb0] sm:$0xff] %v2741_v7   ;;  %v1988_v59 = vmax.f32 %v1772_v31, 0.0  ;;  %v4850_v56 = vmax.f32 %v4849_v46, 0.0  ;;  %v4852_v39 = vmax.f32 %v4851_v4, 0.0  ;;  %v2119_v13 = vmax.f32 %v4853_v24, %v2067_v42 }
 0x1c9   :  { %v2068_v53 = vmax.f32 %v1860_v44, %v1886_v20  ;;  %v2094_v57 = vmax.f32 %v1964_v21, %v1990_v34  ;;  %v2145_v5 = vmax.f32 %v4854_v29, %v2093_v2 }
 0x1ca   :  { %v2066_v19 = vmax.f32 %v4850_v56, %v1884_v6  ;;  %v2092_v12 = vmax.f32 %v4852_v39, %v1988_v59 }
 0x1cb   :  { %v2120_v36 = vmax.f32 %v4855_v49, %v2068_v53  ;;  %v2146_v37 = vmax.f32 %v4856_v23, %v2094_v57 }
 0x1cc   :  { %v2118_v15 = vmax.f32 %v4857_v51, %v2066_v19  ;;  %v2144_v28 = vmax.f32 %v4858_v48, %v2092_v12 }
 0x1cd   :  { %v2691_v32 = vpack.c.bf16 %v2120_v36, %v2119_v13  ;;  %v2756_v30 = vpack.c.bf16 %v2146_v37, %v2145_v5 }
 0x1ce   :  { %v2686_v14 = vpack.c.bf16 %v2118_v15, %v2117_v17  ;;  %v2751_v11 = vpack.c.bf16 %v2144_v28, %v2143_v61 }
 0x1cf   :  { %2769 = vst [vmem:[%s4623_s3 + $0x60] sm:$0xff] %v2691_v32   ;;  %2782 = vst [vmem:[%s4623_s3 + $0xc8] sm:$0xff] %v2756_v30  }
 0x1d0   :  { %2768 = vst [vmem:[%s4623_s3 + $0x58] sm:$0xff] %v2686_v14   ;;  %2781 = vst [vmem:[%s4623_s3 + $0xc0] sm:$0xff] %v2751_v11  }

// kernel: net_forward.4
= control target key start
LH: loop header
LB: loop body
LE: loop exit
PB: predicated region body
PF: predicated region fallthrough
CT: control target
= control target key end

     0   :  { %s1158_s1 = inlined_call_operand.vmem [shape: bf16[256,128], index: 1, kind: input, shape index: {}]   ;;  %s1159_s0 = inlined_call_operand.vmem [shape: bf16[2,4,32,256], index: 0, kind: input, shape index: {}]   ;;  %s1160_s2 = inlined_call_operand.vmem [shape: f32[1,128], index: 2, kind: input, shape index: {}]   ;;  %s1161_s3 = inlined_call_operand.vmem [shape: bf16[2,32,128], index: 3, kind: output, shape index: {}]  }
   0x1   :  { %v819_v0 = vld [vmem:[%s1158_s1 + $0x78] sm:$0xff]   ;;  %v821_v2 = vld [vmem:[%s1158_s1 + $0x70] sm:$0xff]   ;;  %v823_v4 = vld [vmem:[%s1158_s1 + $0x68] sm:$0xff]  }
   0x2   :  { %v820_v1 = vld [vmem:[%s1158_s1 + $0x38] sm:$0xff]   ;;  %691 = vmatprep.subr.bf16.mxu0 %v819_v0  ;;  %803 = vmatprep.subr.bf16.mxu1 %v819_v0  ;;  %v822_v3 = vld [vmem:[%s1158_s1 + $0x30] sm:$0xff]   ;;  %v824_v5 = vld [vmem:[%s1158_s1 + $0x28] sm:$0xff]  }
   0x3   :  { %692 = vmatpush3.bf16.msra.mxu0 %v820_v1  ;;  %811 = vmatpush3.bf16.msra.mxu1 %v820_v1  ;;  %v825_v6 = vld [vmem:[%s1158_s1 + $0x60] sm:$0xff]   ;;  %v827_v8 = vld [vmem:[%s1158_s1 + $0x58] sm:$0xff]   ;;  %v829_v10 = vld [vmem:[%s1158_s1 + $0x50] sm:$0xff]  }
   0x4   :  { %693 = vmatprep.subr.bf16.mxu0 %v821_v2  ;;  %804 = vmatprep.subr.bf16.mxu1 %v821_v2  ;;  %v826_v7 = vld [vmem:[%s1158_s1 + $0x20] sm:$0xff]   ;;  %v828_v9 = vld [vmem:[%s1158_s1 + $0x18] sm:$0xff]   ;;  %v830_v13 = vld [vmem:[%s1158_s1 + $0x10] sm:$0xff]  }
   0x5   :  { %v837_v11 = vld [vmem:[%s1159_s0 + $0x4] ss:$8 sps:$4 sm:$0xff]   ;;  %v835_v18 = vld [vmem:[%s1159_s0] ss:$8 sps:$4 sm:$0xff]   ;;  %v841_v20 = vld [vmem:[%s1159_s0 + $0x14] ss:$8 sps:$4 sm:$0xff]  }
   0x6   :  { %v840_v12 = vld [vmem:[%s1159_s0 + $0x84] ss:$8 sps:$4 sm:$0xff]   ;;  %374 = vmatprep.mubr.bf16.mxu0 %v837_v11  ;;  %v838_v19 = vld [vmem:[%s1159_s0 + $0x80] ss:$8 sps:$4 sm:$0xff]   ;;  %v843_v21 = vld [vmem:[%s1159_s0 + $0x94] ss:$8 sps:$4 sm:$0xff]  }
   0x7   :  { %694 = vmatpush3.bf16.msra.mxu0 %v822_v3  ;;  %812 = vmatpush3.bf16.msra.mxu1 %v822_v3  ;;  %v831_v14 = vld [vmem:[%s1158_s1 + $0x48] sm:$0xff]   ;;  %v833_v16 = vld [vmem:[%s1158_s1 + $0x40] sm:$0xff]   ;;  %v845_v22 = vld [vmem:[%s1159_s0 + $0x10] ss:$8 sps:$4 sm:$0xff]  }
   0x8   :  { %695 = vmatprep.subr.bf16.mxu0 %v823_v4  ;;  %805 = vmatprep.subr.bf16.mxu1 %v823_v4  ;;  %v832_v15 = vld [vmem:[%s1158_s1 + $0x8] sm:$0xff]   ;;  %v834_v17 = vld [vmem:[%s1158_s1] sm:$0xff]   ;;  %v846_v23 = vld [vmem:[%s1159_s0 + $0x90] ss:$8 sps:$4 sm:$0xff]  }
   0x9   :  { %438 = vmatprep.mubr.bf16.mxu1 %v840_v12  ;;  %v847_v24 = vld [vmem:[%s1159_s0 + $0x24] ss:$8 sps:$4 sm:$0xff]   ;;  %v851_v26 = vld [vmem:[%s1159_s0 + $0x20] ss:$8 sps:$4 sm:$0xff]   ;;  %v853_v28 = vld [vmem:[%s1159_s0 + $0x34] ss:$8 sps:$4 sm:$0xff]  }
   0xa   :  { %v849_v25 = vld [vmem:[%s1159_s0 + $0xa4] ss:$8 sps:$4 sm:$0xff]   ;;  %v852_v27 = vld [vmem:[%s1159_s0 + $0xa0] ss:$8 sps:$4 sm:$0xff]   ;;  %v855_v29 = vld [vmem:[%s1159_s0 + $0xb4] ss:$8 sps:$4 sm:$0xff]  }
   0xb   :  { %696 = vmatpush3.bf16.msra.mxu0 %v824_v5  ;;  %813 = vmatpush3.bf16.msra.mxu1 %v824_v5  ;;  %v857_v30 = vld [vmem:[%s1159_s0 + $0x30] ss:$8 sps:$4 sm:$0xff]   ;;  %v859_v32 = vld [vmem:[%s1159_s0 + $0x44] ss:$8 sps:$4 sm:$0xff]   ;;  %v863_v34 = vld [vmem:[%s1159_s0 + $0x40] ss:$8 sps:$4 sm:$0xff]  }
   0xc   :  { %697 = vmatprep.subr.bf16.mxu0 %v825_v6  ;;  %806 = vmatprep.subr.bf16.mxu1 %v825_v6  ;;  %v858_v31 = vld [vmem:[%s1159_s0 + $0xb0] ss:$8 sps:$4 sm:$0xff]   ;;  %v861_v33 = vld [vmem:[%s1159_s0 + $0xc4] ss:$8 sps:$4 sm:$0xff]   ;;  %v864_v35 = vld [vmem:[%s1159_s0 + $0xc0] ss:$8 sps:$4 sm:$0xff]  }
   0xd   :  { %v865_v36 = vld [vmem:[%s1159_s0 + $0x54] ss:$8 sps:$4 sm:$0xff]   ;;  %v869_v38 = vld [vmem:[%s1159_s0 + $0x50] ss:$8 sps:$4 sm:$0xff]   ;;  %v871_v40 = vld [vmem:[%s1159_s0 + $0x64] ss:$8 sps:$4 sm:$0xff]  }
   0xe   :  { %v867_v37 = vld [vmem:[%s1159_s0 + $0xd4] ss:$8 sps:$4 sm:$0xff]   ;;  %v870_v39 = vld [vmem:[%s1159_s0 + $0xd0] ss:$8 sps:$4 sm:$0xff]   ;;  %v873_v41 = vld [vmem:[%s1159_s0 + $0xe4] ss:$8 sps:$4 sm:$0xff]  }
   0xf   :  { %698 = vmatpush3.bf16.msra.mxu0 %v826_v7  ;;  %814 = vmatpush3.bf16.msra.mxu1 %v826_v7  ;;  %v875_v42 = vld [vmem:[%s1159_s0 + $0x60] ss:$8 sps:$4 sm:$0xff]   ;;  %v877_v44 = vld [vmem:[%s1159_s0 + $0x74] ss:$8 sps:$4 sm:$0xff]   ;;  %v881_v46 = vld [vmem:[%s1159_s0 + $0x70] ss:$8 sps:$4 sm:$0xff]  }
  0x10   :  { %699 = vmatprep.subr.bf16.mxu0 %v827_v8  ;;  %807 = vmatprep.subr.bf16.mxu1 %v827_v8  ;;  %v876_v43 = vld [vmem:[%s1159_s0 + $0xe0] ss:$8 sps:$4 sm:$0xff]   ;;  %v879_v45 = vld [vmem:[%s1159_s0 + $0xf4] ss:$8 sps:$4 sm:$0xff]   ;;  %v882_v47 = vld [vmem:[%s1159_s0 + $0xf0] ss:$8 sps:$4 sm:$0xff]  }
  0x13   :  { %700 = vmatpush3.bf16.msra.mxu0 %v828_v9  ;;  %815 = vmatpush3.bf16.msra.mxu1 %v828_v9 }
  0x14   :  { %701 = vmatprep.subr.bf16.mxu0 %v829_v10  ;;  %808 = vmatprep.subr.bf16.mxu1 %v829_v10 }
  0x17   :  { %702 = vmatpush3.bf16.msra.mxu0 %v830_v13  ;;  %816 = vmatpush3.bf16.msra.mxu1 %v830_v13 }
  0x18   :  { %703 = vmatprep.subr.bf16.mxu0 %v831_v14  ;;  %809 = vmatprep.subr.bf16.mxu1 %v831_v14 }
  0x1b   :  { %704 = vmatpush3.bf16.msra.mxu0 %v832_v15  ;;  %817 = vmatpush3.bf16.msra.mxu1 %v832_v15 }
  0x1c   :  { %705 = vmatprep.subr.bf16.mxu0 %v833_v16  ;;  %810 = vmatprep.subr.bf16.mxu1 %v833_v16 }
  0x1f   :  { %706 = vmatpush3.bf16.msra.mxu0 %v834_v17  ;;  %818 = vmatpush3.bf16.msra.mxu1 %v834_v17 }
  0x22   :  { %375 = vmatmul.mubr.bf16.vlgmr.msra.gmra.mxu0 %v835_v18  ;;  %439 = vmatmul.mubr.bf16.vlgmr.msra.gmra.mxu1 %v838_v19 }
  0x23   :  { %382 = vmatprep.mubr.bf16.mxu0 %v841_v20  ;;  %446 = vmatprep.mubr.bf16.mxu1 %v843_v21 }
  0x2a   :  { %383 = vmatmul.mubr.bf16.gmra.mxu0 %v845_v22  ;;  %447 = vmatmul.mubr.bf16.gmra.mxu1 %v846_v23 }
  0x2b   :  { %390 = vmatprep.mubr.bf16.mxu0 %v847_v24  ;;  %454 = vmatprep.mubr.bf16.mxu1 %v849_v25 }
  0x32   :  { %391 = vmatmul.mubr.bf16.gmra.mxu0 %v851_v26  ;;  %455 = vmatmul.mubr.bf16.gmra.mxu1 %v852_v27 }
  0x33   :  { %398 = vmatprep.mubr.bf16.mxu0 %v853_v28  ;;  %462 = vmatprep.mubr.bf16.mxu1 %v855_v29  ;;  %v1054_v28 = vld [vmem:[%s1160_s2] ss:$0 sm:$0xff] }
  0x3a   :  { %399 = vmatmul.mubr.bf16.gmra.mxu0 %v857_v30  ;;  %463 = vmatmul.mubr.bf16.gmra.mxu1 %v858_v31 }
  0x3b   :  { %406 = vmatprep.mubr.bf16.mxu0 %v859_v32  ;;  %470 = vmatprep.mubr.bf16.mxu1 %v861_v33 }
  0x42   :  { %407 = vmatmul.mubr.bf16.gmra.mxu0 %v863_v34  ;;  %471 = vmatmul.mubr.bf16.gmra.mxu1 %v864_v35 }
  0x43   :  { %414 = vmatprep.mubr.bf16.mxu0 %v865_v36  ;;  %478 = vmatprep.mubr.bf16.mxu1 %v867_v37 }
  0x4a   :  { %415 = vmatmul.mubr.bf16.gmra.mxu0 %v869_v38  ;;  %479 = vmatmul.mubr.bf16.gmra.mxu1 %v870_v39 }
  0x4b   :  { %422 = vmatprep.mubr.bf16.mxu0 %v871_v40  ;;  %486 = vmatprep.mubr.bf16.mxu1 %v873_v41 }
  0x52   :  { %423 = vmatmul.mubr.bf16.gmra.mxu0 %v875_v42  ;;  %487 = vmatmul.mubr.bf16.gmra.mxu1 %v876_v43 }
  0x53   :  { %430 = vmatprep.mubr.bf16.mxu0 %v877_v44  ;;  %494 = vmatprep.mubr.bf16.mxu1 %v879_v45 }
  0x5a   :  { %431 = vmatmul.mubr.bf16.gmra.mxu0 %v881_v46  ;;  %495 = vmatmul.mubr.bf16.gmra.mxu1 %v882_v47 }
  0xe2   :  { %v707_v48 = vpop.f32.mrf.mxu0  ;;  %v755_v49 = vpop.f32.mrf.mxu1 }
  0xe4   :  { %v708_v50 = vpop.f32.mrf.mxu0  ;;  %v756_v51 = vpop.f32.mrf.mxu1 }
  0xe5   :  { %v709_v22 = vadd.f32 %v708_v50, %v707_v48  ;;  %v757_v23 = vadd.f32 %v756_v51, %v755_v49 }
  0xe6   :  { %v710_v52 = vpop.f32.mrf.mxu0  ;;  %v758_v53 = vpop.f32.mrf.mxu1 }
  0xe7   :  { %v377_v37 = vadd.f32 %v709_v22, %v1054_v28  ;;  %v441_v38 = vadd.f32 %v757_v23, %v1054_v28 }
  0xe8   :  { %v711_v54 = vpop.f32.mrf.mxu0  ;;  %v759_v55 = vpop.f32.mrf.mxu1 }
  0xe9   :  { %v712_v24 = vadd.f32 %v711_v54, %v710_v52  ;;  %v760_v25 = vadd.f32 %v759_v55, %v758_v53  ;;  %v503_v55 = vmax.f32 %v377_v37, 0.0 }
  0xea   :  { %v713_v56 = vpop.f32.mrf.mxu0  ;;  %v761_v57 = vpop.f32.mrf.mxu1 }
  0xeb   :  { %v380_v39 = vadd.f32 %v712_v24, %v1054_v28  ;;  %v444_v40 = vadd.f32 %v760_v25, %v1054_v28 }
  0xec   :  { %v714_v58 = vpop.f32.mrf.mxu0  ;;  %v762_v59 = vpop.f32.mrf.mxu1 }
  0xed   :  { %v715_v29 = vadd.f32 %v714_v58, %v713_v56  ;;  %v763_v30 = vadd.f32 %v762_v59, %v761_v57  ;;  %v519_v56 = vmax.f32 %v441_v38, 0.0  ;;  %v504_v57 = vmax.f32 %v380_v39, 0.0 }
  0xee   :  { %v716_v60 = vpop.f32.mrf.mxu0  ;;  %v764_v61 = vpop.f32.mrf.mxu1  ;;  %v520_v58 = vmax.f32 %v444_v40, 0.0 }
  0xef   :  { %v1069_v43 = vadd.f32 %v715_v29, %v1054_v28  ;;  %v1072_v44 = vadd.f32 %v763_v30, %v1054_v28 }
  0xf0   :  { %v717_v62 = vpop.f32.mrf.mxu0  ;;  %v765_v63 = vpop.f32.mrf.mxu1 }
  0xf1   :  { %v718_v51 = vadd.f32 %v717_v62, %v716_v60  ;;  %v766_v52 = vadd.f32 %v765_v63, %v764_v61 }
  0xf2   :  { %v719_v0 = vpop.f32.mrf.mxu0  ;;  %v767_v1 = vpop.f32.mrf.mxu1 }
  0xf3   :  { %v1081_v62 = vadd.f32 %v718_v51, %v1054_v28  ;;  %v1084_v63 = vadd.f32 %v766_v52, %v1054_v28 }
  0xf4   :  { %v720_v2 = vpop.f32.mrf.mxu0  ;;  %v768_v3 = vpop.f32.mrf.mxu1 }
  0xf5   :  { %v721_v31 = vadd.f32 %v720_v2, %v719_v0  ;;  %v769_v32 = vadd.f32 %v768_v3, %v767_v1  ;;  %v505_v1 = vmax.f32 %v1069_v43, 0.0  ;;  %v521_v2 = vmax.f32 %v1072_v44, 0.0 }
  0xf6   :  { %v722_v4 = vpop.f32.mrf.mxu0  ;;  %v770_v5 = vpop.f32.mrf.mxu1 }
  0xf7   :  { %v393_v45 = vadd.f32 %v721_v31, %v1054_v28  ;;  %v457_v46 = vadd.f32 %v769_v32, %v1054_v28 }
  0xf8   :  { %v723_v6 = vpop.f32.mrf.mxu0  ;;  %v771_v7 = vpop.f32.mrf.mxu1 }
  0xf9   :  { %v724_v33 = vadd.f32 %v723_v6, %v722_v4  ;;  %v772_v34 = vadd.f32 %v771_v7, %v770_v5  ;;  %v507_v3 = vmax.f32 %v393_v45, 0.0  ;;  %v523_v4 = vmax.f32 %v457_v46, 0.0 }
  0xfa   :  { %v725_v8 = vpop.f32.mrf.mxu0  ;;  %v773_v9 = vpop.f32.mrf.mxu1 }
  0xfb   :  { %v396_v47 = vadd.f32 %v724_v33, %v1054_v28  ;;  %v460_v48 = vadd.f32 %v772_v34, %v1054_v28  ;;  %v1094_v23 = vmax.f32 %v503_v55, %v507_v3  ;;  %v1096_v24 = vmax.f32 %v519_v56, %v523_v4 }
  0xfc   :  { %v726_v10 = vpop.f32.mrf.mxu0  ;;  %v774_v11 = vpop.f32.mrf.mxu1 }
  0xfd   :  { %v727_v53 = vadd.f32 %v726_v10, %v725_v8  ;;  %v775_v54 = vadd.f32 %v774_v11, %v773_v9  ;;  %v508_v5 = vmax.f32 %v396_v47, 0.0  ;;  %v524_v6 = vmax.f32 %v460_v48, 0.0 }
  0xfe   :  { %v1047_v12 = vpop.f32.mrf.mxu0  ;;  %v1049_v13 = vpop.f32.mrf.mxu1 }
  0xff   :  { %v1087_v8 = vadd.f32 %v727_v53, %v1054_v28  ;;  %v1090_v9 = vadd.f32 %v775_v54, %v1054_v28  ;;  %v1098_v30 = vmax.f32 %v504_v57, %v508_v5  ;;  %v1100_v31 = vmax.f32 %v520_v58, %v524_v6 }
 0x100   :  { %v729_v14 = vpop.f32.mrf.mxu0  ;;  %v777_v15 = vpop.f32.mrf.mxu1 }
 0x101   :  { %v730_v10 = vadd.f32 %v729_v14, %v1047_v12  ;;  %v778_v11 = vadd.f32 %v777_v15, %v1049_v13  ;;  %v509_v15 = vmax.f32 %v1087_v8, 0.0 }
 0x102   :  { %v731_v16 = vpop.f32.mrf.mxu0  ;;  %v779_v17 = vpop.f32.mrf.mxu1 }
 0x103   :  { %v1112_v33 = vadd.f32 %v778_v11, %v1054_v28 }
 0x104   :  { %v732_v18 = vpop.f32.mrf.mxu0  ;;  %v780_v19 = vpop.f32.mrf.mxu1 }
 0x105   :  { %v733_v7 = vadd.f32 %v732_v18, %v731_v16  ;;  %v781_v22 = vadd.f32 %v780_v19, %v779_v17  ;;  %v526_v5 = vmax.f32 %v1112_v33, 0.0 }
 0x106   :  { %v734_v20 = vpop.f32.mrf.mxu0  ;;  %v782_v21 = vpop.f32.mrf.mxu1 }
 0x107   :  { %v409_v32 = vadd.f32 %v733_v7, %v1054_v28  ;;  %v473_v12 = vadd.f32 %v781_v22, %v1054_v28 }
 0x108   :  { %v735_v26 = vpop.f32.mrf.mxu0  ;;  %v783_v27 = vpop.f32.mrf.mxu1 }
 0x109   :  { %v736_v16 = vadd.f32 %v735_v26, %v734_v20  ;;  %v784_v17 = vadd.f32 %v783_v27, %v782_v21  ;;  %v525_v20 = vmax.f32 %v1090_v9, 0.0  ;;  %v1109_v27 = vadd.f32 %v730_v10, %v1054_v28 }
 0x10a   :  { %v1056_v35 = vpop.f32.mrf.mxu0  ;;  %v1058_v36 = vpop.f32.mrf.mxu1  ;;  %v511_v48 = vmax.f32 %v409_v32, 0.0  ;;  %v527_v51 = vmax.f32 %v473_v12, 0.0 }
 0x10b   :  { %v412_v34 = vadd.f32 %v736_v16, %v1054_v28  ;;  %v476_v37 = vadd.f32 %v784_v17, %v1054_v28  ;;  %v510_v4 = vmax.f32 %v1109_v27, 0.0 }
 0x10c   :  { %v1064_v41 = vpop.f32.mrf.mxu0  ;;  %v1066_v42 = vpop.f32.mrf.mxu1 }
 0x10d   :  { %v739_v52 = vadd.f32 %v1064_v41, %v1056_v35  ;;  %v787_v53 = vadd.f32 %v1066_v42, %v1058_v36  ;;  %v512_v35 = vmax.f32 %v412_v34, 0.0  ;;  %v528_v41 = vmax.f32 %v476_v37, 0.0 }
 0x10e   :  { %v740_v49 = vpop.f32.mrf.mxu0  ;;  %v788_v50 = vpop.f32.mrf.mxu1 }
 0x10f   :  { %v417_v42 = vadd.f32 %v739_v52, %v1054_v28 }
 0x110   :  { %v741_v59 = vpop.f32.mrf.mxu0  ;;  %v789_v0 = vpop.f32.mrf.mxu1 }
 0x111   :  { %v742_v56 = vadd.f32 %v741_v59, %v740_v49  ;;  %v790_v57 = vadd.f32 %v789_v0, %v788_v50  ;;  %v481_v49 = vadd.f32 %v787_v53, %v1054_v28  ;;  %v513_v33 = vmax.f32 %v417_v42, 0.0 }
 0x112   :  { %v743_v60 = vpop.f32.mrf.mxu0  ;;  %v791_v61 = vpop.f32.mrf.mxu1 }
 0x113   :  { %v420_v11 = vadd.f32 %v742_v56, %v1054_v28  ;;  %v484_v16 = vadd.f32 %v790_v57, %v1054_v28  ;;  %v529_v34 = vmax.f32 %v481_v49, 0.0 }
 0x114   :  { %v744_v18 = vpop.f32.mrf.mxu0  ;;  %v792_v19 = vpop.f32.mrf.mxu1 }
 0x115   :  { %v745_v25 = vadd.f32 %v744_v18, %v743_v60  ;;  %v793_v29 = vadd.f32 %v792_v19, %v791_v61 }
 0x116   :  { %v746_v14 = vpop.f32.mrf.mxu0  ;;  %v794_v13 = vpop.f32.mrf.mxu1 }
 0x117   :  { %v425_v21 = vadd.f32 %v745_v25, %v1054_v28  ;;  %v489_v26 = vadd.f32 %v793_v29, %v1054_v28 }
 0x118   :  { %v747_v38 = vpop.f32.mrf.mxu0  ;;  %v795_v39 = vpop.f32.mrf.mxu1 }
 0x119   :  { %v515_v40 = vmax.f32 %v425_v21, 0.0  ;;  %v531_v45 = vmax.f32 %v489_v26, 0.0  ;;  %v748_v46 = vadd.f32 %v747_v38, %v746_v14  ;;  %v796_v47 = vadd.f32 %v795_v39, %v794_v13 }
 0x11a   :  { %v749_v54 = vpop.f32.mrf.mxu0  ;;  %v797_v55 = vpop.f32.mrf.mxu1 }
 0x11b   :  { %v428_v58 = vadd.f32 %v748_v46, %v1054_v28  ;;  %v492_v3 = vadd.f32 %v796_v47, %v1054_v28  ;;  %v543_v6 = vmax.f32 %v511_v48, %v515_v40  ;;  %v547_v7 = vmax.f32 %v527_v51, %v531_v45 }
 0x11c   :  { %v750_v22 = vpop.f32.mrf.mxu0  ;;  %v798_v60 = vpop.f32.mrf.mxu1  ;;  %v506_v45 = vmax.f32 %v1081_v62, 0.0  ;;  %v522_v46 = vmax.f32 %v1084_v63, 0.0  ;;  %v514_v47 = vmax.f32 %v420_v11, 0.0  ;;  %v541_v62 = vmax.f32 %v521_v2, %v525_v20 }
 0x11d   :  { %v516_v61 = vmax.f32 %v428_v58, 0.0  ;;  %v532_v36 = vmax.f32 %v492_v3, 0.0  ;;  %v751_v50 = vadd.f32 %v750_v22, %v749_v54  ;;  %v799_v59 = vadd.f32 %v798_v60, %v797_v55 }
 0x11e   :  { %v752_v0 = vpop.f32.mrf.mxu0  ;;  %v800_v10 = vpop.f32.mrf.mxu1  ;;  %v551_v19 = vmax.f32 %v1094_v23, %v543_v6  ;;  %v555_v25 = vmax.f32 %v1096_v24, %v547_v7  ;;  %v538_v63 = vmax.f32 %v506_v45, %v510_v4  ;;  %v542_v53 = vmax.f32 %v522_v46, %v526_v5 }
 0x11f   :  { %v544_v17 = vmax.f32 %v512_v35, %v516_v61  ;;  %v548_v18 = vmax.f32 %v528_v41, %v532_v36  ;;  %v433_v29 = vadd.f32 %v751_v50, %v1054_v28  ;;  %v497_v32 = vadd.f32 %v799_v59, %v1054_v28 }
 0x120   :  { %v753_v12 = vpop.f32.mrf.mxu0  ;;  %v801_v14 = vpop.f32.mrf.mxu1 }
 0x121   :  { %v552_v13 = vmax.f32 %v1098_v30, %v544_v17  ;;  %v556_v21 = vmax.f32 %v1100_v31, %v548_v18  ;;  %v754_v26 = vadd.f32 %v753_v12, %v752_v0  ;;  %v802_v27 = vadd.f32 %v801_v14, %v800_v10 }
 0x122   :  { %v517_v37 = vmax.f32 %v433_v29, 0.0  ;;  %v533_v38 = vmax.f32 %v497_v32, 0.0  ;;  %v530_v30 = vmax.f32 %v484_v16, 0.0 }
 0x123   :  { %v671_v39 = vpack.c.bf16 %v552_v13, %v551_v19  ;;  %v681_v23 = vpack.c.bf16 %v556_v21, %v555_v25  ;;  %v436_v24 = vadd.f32 %v754_v26, %v1054_v28  ;;  %v500_v40 = vadd.f32 %v802_v27, %v1054_v28 }
 0x124   :  { %v545_v31 = vmax.f32 %v513_v33, %v517_v37  ;;  %v549_v48 = vmax.f32 %v529_v34, %v533_v38  ;;  %v537_v28 = vmax.f32 %v505_v1, %v509_v15 }
 0x125   :  { %672 = vst [vmem:[%s1161_s3] sm:$0xff] %v671_v39   ;;  %689 = vst [vmem:[%s1161_s3 + $0x10] sm:$0xff] %v681_v23   ;;  %v518_v51 = vmax.f32 %v436_v24, 0.0  ;;  %v534_v52 = vmax.f32 %v500_v40, 0.0 }
 0x126   :  { %v553_v56 = vmax.f32 %v537_v28, %v545_v31  ;;  %v557_v57 = vmax.f32 %v541_v62, %v549_v48 }
 0x127   :  { %v546_v54 = vmax.f32 %v514_v47, %v518_v51  ;;  %v550_v55 = vmax.f32 %v530_v30, %v534_v52 }
 0x129   :  { %v554_v58 = vmax.f32 %v538_v63, %v546_v54  ;;  %v558_v3 = vmax.f32 %v542_v53, %v550_v55 }
 0x12b   :  { %v676_v6 = vpack.c.bf16 %v554_v58, %v553_v56  ;;  %v686_v7 = vpack.c.bf16 %v558_v3, %v557_v57 }
 0x12d   :  { %688 = vst [vmem:[%s1161_s3 + $0x8] sm:$0xff] %v676_v6   ;;  %690 = vst [vmem:[%s1161_s3 + $0x18] sm:$0xff] %v686_v7  }

// kernel: net_forward.5
= control target key start
LH: loop header
LB: loop body
LE: loop exit
PB: predicated region body
PF: predicated region fallthrough
CT: control target
= control target key end

     0   :  { %v112_v30 = vlaneseq  ;;  %v870_v34 = vmov 1966171168   ;;  %v871_v37 = vmov 0.0   ;;  %s1091_s0 = inlined_call_operand.vmem [shape: bf16[2,512], index: 0, kind: input, shape index: {}]   ;;  %s1092_s1 = inlined_call_operand.vmem [shape: bf16[512,128], index: 1, kind: input, shape index: {}]   ;;  %s1093_s2 = inlined_call_operand.vmem [shape: f32[1,128], index: 2, kind: input, shape index: {}]   ;;  %s1094_s3 = inlined_call_operand.vmem [shape: bf16[128,128], index: 3, kind: input, shape index: {}]   ;;  %s1095_s4 = inlined_call_operand.vmem [shape: f32[1,128], index: 4, kind: input, shape index: {}]   ;;  %s1096_s5 = inlined_call_operand.vmem [shape: bf16[128,128], index: 5, kind: input, shape index: {}]   ;;  %s1097_s6 = inlined_call_operand.vmem [shape: f32[1,128], index: 6, kind: input, shape index: {}]   ;;  %s1098_s7 = inlined_call_operand.hbm [shape: f32[2,128], index: 7, kind: output, shape index: {}]  }
   0x1   :  { %v800_v0 = vld [vmem:[%s1092_s1 + $0x78] sm:$0xff]   ;;  %v804_v4 = vld [vmem:[%s1092_s1 + $0x70] sm:$0xff]   ;;  %v808_v8 = vld [vmem:[%s1092_s1 + $0x68] sm:$0xff]   ;;  %v110_v35 = vunpack.c.l.s4 %v870_v34 }
   0x2   :  { %v801_v1 = vld [vmem:[%s1092_s1 + $0xf8] sm:$0xff]   ;;  %694 = vmatprep.subr.bf16.mxu0 %v800_v0  ;;  %v805_v5 = vld [vmem:[%s1092_s1 + $0xf0] sm:$0xff]   ;;  %v809_v9 = vld [vmem:[%s1092_s1 + $0xe8] sm:$0xff]   ;;  %v113_v36 = vshrl.u32 %v112_v30, 7 }
   0x3   :  { %v802_v2 = vld [vmem:[%s1092_s1 + $0x38] sm:$0xff]   ;;  %716 = vmatprep.subr.bf16.mxu1 %v801_v1  ;;  %v806_v6 = vld [vmem:[%s1092_s1 + $0x30] sm:$0xff]   ;;  %v810_v10 = vld [vmem:[%s1092_s1 + $0x28] sm:$0xff]   ;;  %v111_v39 = vunpack.c.0.s8 %v110_v35 }
   0x4   :  { %v803_v3 = vld [vmem:[%s1092_s1 + $0xb8] sm:$0xff]   ;;  %695 = vmatpush3.bf16.msra.mxu0 %v802_v2  ;;  %v807_v7 = vld [vmem:[%s1092_s1 + $0xb0] sm:$0xff]   ;;  %v811_v11 = vld [vmem:[%s1092_s1 + $0xa8] sm:$0xff]  }
   0x5   :  { %717 = vmatpush3.bf16.msra.mxu1 %v803_v3  ;;  %696 = vmatprep.subr.bf16.mxu0 %v804_v4  ;;  %v812_v12 = vld [vmem:[%s1092_s1 + $0x60] sm:$0xff]   ;;  %v816_v16 = vld [vmem:[%s1092_s1 + $0x58] sm:$0xff]   ;;  %v820_v20 = vld [vmem:[%s1092_s1 + $0x50] sm:$0xff]   ;;  %v114_v40 = vsub.s32 %v111_v39, %v113_v36 }
   0x6   :  { %718 = vmatprep.subr.bf16.mxu1 %v805_v5  ;;  %v813_v13 = vld [vmem:[%s1092_s1 + $0xe0] sm:$0xff]   ;;  %v817_v17 = vld [vmem:[%s1092_s1 + $0xd8] sm:$0xff]   ;;  %v821_v21 = vld [vmem:[%s1092_s1 + $0xd0] sm:$0xff]  }
   0x7   :  { %v814_v14 = vld [vmem:[%s1092_s1 + $0x20] sm:$0xff]   ;;  %v818_v18 = vld [vmem:[%s1092_s1 + $0x18] sm:$0xff]   ;;  %v822_v22 = vld [vmem:[%s1092_s1 + $0x10] sm:$0xff]  }
   0x8   :  { %697 = vmatpush3.bf16.msra.mxu0 %v806_v6  ;;  %v815_v15 = vld [vmem:[%s1092_s1 + $0xa0] sm:$0xff]   ;;  %v819_v19 = vld [vmem:[%s1092_s1 + $0x98] sm:$0xff]   ;;  %v823_v23 = vld [vmem:[%s1092_s1 + $0x90] sm:$0xff]  }
   0x9   :  { %719 = vmatpush3.bf16.msra.mxu1 %v807_v7  ;;  %698 = vmatprep.subr.bf16.mxu0 %v808_v8  ;;  %v824_v24 = vld [vmem:[%s1092_s1 + $0x48] sm:$0xff]   ;;  %v828_v28 = vld [vmem:[%s1092_s1 + $0x40] sm:$0xff]   ;;  %v832_v41 = vld [vmem:[%s1094_s3 + $0x38] sm:$0xff]  }
   0xa   :  { %720 = vmatprep.subr.bf16.mxu1 %v809_v9  ;;  %v825_v25 = vld [vmem:[%s1092_s1 + $0xc8] sm:$0xff]   ;;  %v829_v29 = vld [vmem:[%s1092_s1 + $0xc0] sm:$0xff]   ;;  %v833_v46 = vld [vmem:[%s1094_s3 + $0x30] sm:$0xff]  }
   0xb   :  { %v826_v26 = vld [vmem:[%s1092_s1 + $0x8] sm:$0xff]   ;;  %v830_v31 = vld [vmem:[%s1092_s1] sm:$0xff]  }
   0xc   :  { %699 = vmatpush3.bf16.msra.mxu0 %v810_v10  ;;  %v827_v27 = vld [vmem:[%s1092_s1 + $0x88] sm:$0xff]   ;;  %v831_v32 = vld [vmem:[%s1092_s1 + $0x80] sm:$0xff]  }
   0xd   :  { %721 = vmatpush3.bf16.msra.mxu1 %v811_v11  ;;  %700 = vmatprep.subr.bf16.mxu0 %v812_v12  ;;  %v643_v33 = vld.sshfl [vmem:[%s1091_s0] sm:$0x33 pattern:$0x75316420] }
   0xe   :  { %722 = vmatprep.subr.bf16.mxu1 %v813_v13  ;;  %v108_v38 = vcombine.high %v643_v33, %v643_v33  ;;  %v115_v43 = vrot.slane %v643_v33, %v114_v40 }
  0x10   :  { %701 = vmatpush3.bf16.msra.mxu0 %v814_v14  ;;  %v122_v42 = vrot.slane %v108_v38, %v114_v40  ;;  %v123_v45 = vcombine.high %v115_v43, %v115_v43 }
  0x11   :  { %723 = vmatpush3.bf16.msra.mxu1 %v815_v15  ;;  %702 = vmatprep.subr.bf16.mxu0 %v816_v16 }
  0x12   :  { %724 = vmatprep.subr.bf16.mxu1 %v817_v17  ;;  %353 = vmatprep.mubr.bf16.mxu0 %v122_v42  ;;  %v124_v44 = vcombine.high %v122_v42, %v122_v42 }
  0x14   :  { %703 = vmatpush3.bf16.msra.mxu0 %v818_v18  ;;  %393 = vmatprep.mubr.bf16.mxu1 %v124_v44 }
  0x15   :  { %725 = vmatpush3.bf16.msra.mxu1 %v819_v19  ;;  %704 = vmatprep.subr.bf16.mxu0 %v820_v20 }
  0x16   :  { %726 = vmatprep.subr.bf16.mxu1 %v821_v21 }
  0x18   :  { %705 = vmatpush3.bf16.msra.mxu0 %v822_v22 }
  0x19   :  { %727 = vmatpush3.bf16.msra.mxu1 %v823_v23  ;;  %706 = vmatprep.subr.bf16.mxu0 %v824_v24 }
  0x1a   :  { %728 = vmatprep.subr.bf16.mxu1 %v825_v25 }
  0x1c   :  { %707 = vmatpush3.bf16.msra.mxu0 %v826_v26 }
  0x1d   :  { %729 = vmatpush3.bf16.msra.mxu1 %v827_v27  ;;  %708 = vmatprep.subr.bf16.mxu0 %v828_v28 }
  0x1e   :  { %730 = vmatprep.subr.bf16.mxu1 %v829_v29 }
  0x20   :  { %709 = vmatpush3.bf16.msra.mxu0 %v830_v31 }
  0x21   :  { %731 = vmatpush3.bf16.msra.mxu1 %v831_v32  ;;  %756 = vmatprep.subr.bf16.mxu0 %v871_v37 }
  0x22   :  { %776 = vmatprep.subr.bf16.mxu1 %v871_v37 }
  0x23   :  { %354 = vmatmul.mubr.bf16.vlgmr.msra.gmra.mxu0 %v115_v43 }
  0x24   :  { %757 = vmatpush3.bf16.msra.mxu0 %v832_v41  ;;  %394 = vmatmul.mubr.bf16.vlgmr.msra.gmra.mxu1 %v123_v45 }
  0x25   :  { %758 = vmatprep.subr.bf16.mxu0 %v871_v37 }
  0x26   :  { %12 = vsyncpa [#allocation3], 0  ;;  %v834_v47 = vld [vmem:[%s1094_s3 + $0x28] sm:$0xff]   ;;  %v835_v48 = vld [vmem:[%s1094_s3 + $0x20] sm:$0xff]   ;;  %vm872_vm0 = vmmov 0   ;;  %s873_s30 = smov [#allocation2]  }
  0x27   :  { %v836_v49 = vld [vmem:[%s1094_s3 + $0x18] sm:$0xff]   ;;  %v837_v50 = vld [vmem:[%s1094_s3 + $0x10] sm:$0xff]   ;;  %v838_v51 = vld [vmem:[%s1094_s3 + $0x8] sm:$0xff]   ;;  %772 = vmatprep.mubr.msk.bf16.mxu0 %vm872_vm0, %v871_v37  ;;  %792 = vmatprep.mubr.msk.bf16.mxu1 %vm872_vm0, %v871_v37  ;;  %s634_s8 = sshll.u32 %s873_s30, 4  ;;  %s635_s8 = int_to_ptr.vmem [resolvable:$true] %s634_s8 }
  0x28   :  { %759 = vmatpush3.bf16.msra.mxu0 %v833_v46  ;;  %v839_v52 = vld [vmem:[%s1094_s3] sm:$0xff]   ;;  %v840_v53 = vld [vmem:[%s1096_s5 + $0x38] sm:$0xff]   ;;  %v841_v54 = vld [vmem:[%s1096_s5 + $0x30] sm:$0xff]   ;;  %p853_p1 = scmp.lt.s32.totalorder %s635_s8, %s635_s8 }
  0x29   :  { %760 = vmatprep.subr.bf16.mxu0 %v871_v37  ;;  %777 = vmatpush3.bf16.msra.mxu1 %v840_v53  ;;  %v842_v55 = vld [vmem:[%s1096_s5 + $0x28] sm:$0xff]   ;;  %v843_v56 = vld [vmem:[%s1096_s5 + $0x20] sm:$0xff]   ;;  %v844_v57 = vld [vmem:[%s1096_s5 + $0x18] sm:$0xff]  }
  0x2a   :  { %778 = vmatprep.subr.bf16.mxu1 %v871_v37  ;;  %v845_v58 = vld [vmem:[%s1096_s5 + $0x10] sm:$0xff]   ;;  %v642_v61 = vld [vmem:[%s1093_s2] ss:$0 sm:$0xff]  ;;  %v846_v10 = vld [vmem:[%s1096_s5 + $0x8] sm:$0xff]  }
  0x2b   :  { %v847_v11 = vld [vmem:[%s1096_s5] sm:$0xff]  }
  0x2c   :  { %761 = vmatpush3.bf16.msra.mxu0 %v834_v47  ;;  %v676_v12 = vld [vmem:[%s1095_s4] ss:$0 sm:$0xff]  ;;  %s848_s4 = scalar_lea.vmem %s635_s8, 32 }
  0x2d   :  { %762 = vmatprep.subr.bf16.mxu0 %v871_v37  ;;  %779 = vmatpush3.bf16.msra.mxu1 %v841_v54  ;;  %v685_v20 = vld [vmem:[%s1097_s6] ss:$0 sm:$0xff]  ;;  %p849_p0 = scmp.ne.s32.totalorder %s635_s8, %s848_s4  ;;  %p854_p2 = scmp.lt.s32.totalorder %s848_s4, %s848_s4 }
  0x2e   :  { %780 = vmatprep.subr.bf16.mxu1 %v871_v37 }
  0x2f   :  { %p855_p3 = por %p854_p2, %p853_p1 }
  0x30   :  { %763 = vmatpush3.bf16.msra.mxu0 %v835_v48 }
  0x31   :  { %764 = vmatprep.subr.bf16.mxu0 %v871_v37  ;;  %781 = vmatpush3.bf16.msra.mxu1 %v842_v55  ;;  %p856_p4 = pnand %p855_p3, %p849_p0 }
  0x32   :  { %782 = vmatprep.subr.bf16.mxu1 %v871_v37 }
  0x34   :  { %765 = vmatpush3.bf16.msra.mxu0 %v836_v49 }
  0x35   :  { %766 = vmatprep.subr.bf16.mxu0 %v871_v37  ;;  %783 = vmatpush3.bf16.msra.mxu1 %v843_v56 }
  0x36   :  { %784 = vmatprep.subr.bf16.mxu1 %v871_v37 }
  0x38   :  { %767 = vmatpush3.bf16.msra.mxu0 %v837_v50 }
  0x39   :  { %768 = vmatprep.subr.bf16.mxu0 %v871_v37  ;;  %785 = vmatpush3.bf16.msra.mxu1 %v844_v57 }
  0x3a   :  { %786 = vmatprep.subr.bf16.mxu1 %v871_v37 }
  0x3c   :  { %769 = vmatpush3.bf16.msra.mxu0 %v838_v51 }
  0x3d   :  { %770 = vmatprep.subr.bf16.mxu0 %v871_v37  ;;  %787 = vmatpush3.bf16.msra.mxu1 %v845_v58 }
  0x3e   :  { %788 = vmatprep.subr.bf16.mxu1 %v871_v37 }
  0x40   :  { %771 = vmatpush3.bf16.msra.mxu0 %v839_v52 }
  0x41   :  { %789 = vmatpush3.bf16.msra.mxu1 %v846_v10 }
  0x42   :  { %790 = vmatprep.subr.bf16.mxu1 %v871_v37 }
  0x45   :  { %791 = vmatpush3.bf16.msra.mxu1 %v847_v11 }
  0xe3   :  { %v710_v59 = vpop.f32.mrf.mxu0 }
  0xe4   :  { %v732_v60 = vpop.f32.mrf.mxu1 }
  0xe5   :  { %v711_v62 = vpop.f32.mrf.mxu0 }
  0xe6   :  { %v712_v63 = vadd.f32 %v711_v62, %v710_v59  ;;  %v733_v0 = vpop.f32.mrf.mxu1 }
  0xe7   :  { %v713_v1 = vpop.f32.mrf.mxu0  ;;  %v734_v3 = vadd.f32 %v733_v0, %v732_v60 }
  0xe8   :  { %v356_v2 = vadd.f32 %v712_v63, %v642_v61  ;;  %v735_v4 = vpop.f32.mrf.mxu1 }
  0xe9   :  { %v714_v5 = vpop.f32.mrf.mxu0 }
  0xea   :  { %v396_v6 = vadd.f32 %v734_v3, %v356_v2  ;;  %v736_v7 = vpop.f32.mrf.mxu1 }
  0xec   :  { %v401_v8 = vmax.f32 %v396_v6, 0.0 }
  0xee   :  { %v402_v9 = vpack.c.bf16 %v401_v8, %v401_v8 }
  0xf0   :  { %773 = vmatmul.mubr.bf16.vlgmr.msra.gmra.mxu0 %v402_v9 }
 0x1b0   :  { %v508_v13 = vpop.f32.mrf.mxu0 }
 0x1b1   :  { %v509_v14 = vadd.f32 %v676_v12, %v508_v13 }
 0x1b2   :  { %v774_v15 = vpop.f32.mrf.mxu0 }
 0x1b3   :  { %v514_v16 = vmax.f32 %v509_v14, 0.0 }
 0x1b4   :  { %v511_v17 = vpop.f32.mrf.mxu0 }
 0x1b5   :  { %v515_v18 = vpack.c.bf16 %v514_v16, %v514_v16 }
 0x1b6   :  { %v775_v19 = vpop.f32.mrf.mxu0 }
 0x1b7   :  { %793 = vmatmul.mubr.bf16.vlgmr.msra.gmra.mxu1 %v515_v18 }
 0x277   :  { %v621_v21 = vpop.f32.mrf.mxu1 }
 0x278   :  { %v622_v22 = vadd.f32 %v685_v20, %v621_v21 }
 0x279   :  { %v794_v23 = vpop.f32.mrf.mxu1 }
 0x27a   :  { %627 = vst [vmem:[#allocation2] sm:$0x3] %v622_v22 }
 0x27b   :  { %v624_v24 = vpop.f32.mrf.mxu1 }
 0x27c   :  { %859 = shalt.err (!%p856_p4)
}
 0x27d   :  { %637 = dma.vmem_to_hbm [thread:$0]  %s635_s8, 32, %s1098_s7, [#allocation3]   ;;  %v795_v25 = vpop.f32.mrf.mxu1 }
 0x27e   :  { %868 = dma.done.wait [#allocation3], 32  }
 0x27f   :  { %869 = vsyncadd [#allocation3], 4294967264 }
 0x280   :  { %641 = vsyncpa [#allocation3], 1 }

</bundles_post_ra>
